<compile_context>
chip_gen: v5e
topology: v5e:2x2
jax: 0.10.0
libtpu: 0.0.40
codegen_flags: <defaults>
</compile_context>

<pallas_src>
from functools import partial

import jax
import jax.numpy as jnp
from jax.experimental import pallas as pl
from jax.experimental.pallas import tpu as pltpu


def attnmil3_kernel(x_ref, w1_ref, wvu_ref, bvu_ref, ww_ref, bw_ref,
                    m_ref, l_ref, acc_ref, aout_ref, *, n_valid, mask_tail):
    c = pl.program_id(0)            # core (parallel) axis
    i = pl.program_id(1)            # instance-block (reduction) axis
    bpc = pl.num_programs(1)
    tn = x_ref.shape[0]
    d_attn = wvu_ref.shape[1] // 2
    k_tok = ww_ref.shape[0]

    # --- init this core's running accumulators on its first block ---
    @pl.when(i == 0)
    def _init():
        m_ref[...] = jnp.full_like(m_ref, -1e30)
        l_ref[...] = jnp.zeros_like(l_ref)
        acc_ref[...] = jnp.zeros_like(acc_ref)

    # --- per-block compute (bf16 operands, f32 accumulation) ---
    x = x_ref[...].astype(jnp.bfloat16)                                    # (TN, feat_d)

    if mask_tail:
        # Zero out-of-range rows BEFORE any matmul so garbage in the ragged tail block
        # can never inject Inf/NaN into med or p @ med.
        gstart = (c * bpc + i) * tn
        row = gstart + jax.lax.broadcasted_iota(jnp.int32, (tn, 1), 0)
        x = jnp.where(row < n_valid, x, jnp.zeros_like(x))

    # DimReduction: relu(x @ W1), no bias.
    med32 = jnp.maximum(
        jnp.dot(x, w1_ref[...], preferred_element_type=jnp.float32), 0.0)  # (TN, D_inner) f32
    med = med32.astype(jnp.bfloat16)

    # Gated attention: single fused matmul for the V and U branches, then split.
    vu = jnp.dot(med, wvu_ref[...], preferred_element_type=jnp.float32) + bvu_ref[...]
    gated = (jnp.tanh(vu[:, :d_attn]) * jax.nn.sigmoid(vu[:, d_attn:])
             ).astype(jnp.bfloat16)                                        # (TN, D) bf16

    # attention_weights then transpose(1,0): contract over the last axis of both
    # operands so A is emitted directly as (K, TN) (lane-dense output block).
    a_blk = jax.lax.dot_general(
        ww_ref[...], gated,
        dimension_numbers=(((1,), (1,)), ((), ())),
        preferred_element_type=jnp.float32) + bw_ref[...]                  # (K, TN) f32

    if mask_tail:
        col = (c * bpc + i) * tn + jax.lax.broadcasted_iota(jnp.int32, (k_tok, tn), 1)
        a_blk = jnp.where(col < n_valid, a_blk, -1e30)

    aout_ref[...] = a_blk

    # TODO(synk): training-time random top-k masking (torch.topk + torch.rand +
    # scatter_) is not implemented; this kernel reproduces the n_masked_patch == 0
    # / is_train=False path.

    # --- online softmax over instances (dim=1), per-core partials ---
    m_prev = m_ref[...]                                                    # (K, 1)
    m_new = jnp.maximum(m_prev, jnp.max(a_blk, axis=1, keepdims=True))
    alpha = jnp.exp(m_prev - m_new)
    p = jnp.exp(a_blk - m_new)                                             # (K, TN) f32
    l_ref[...] = alpha * l_ref[...] + jnp.sum(p, axis=1, keepdims=True)
    acc_ref[...] = alpha * acc_ref[...] + jnp.dot(
        p.astype(jnp.bfloat16), med, preferred_element_type=jnp.float32)   # (K, D_inner)
    m_ref[...] = m_new


def prepare_params(params):
    """One-time re-layout / bf16 cast of torch-convention parameters."""
    (fc1_w, v_w, v_b, u_w, u_b, aw_w, aw_b, cls_w, cls_b) = params
    w1 = jnp.asarray(fc1_w.T, jnp.bfloat16)                               # (feat_d, D_inner)
    w_vu = jnp.concatenate([v_w.T, u_w.T], axis=1).astype(jnp.bfloat16)   # (D_inner, 2D)
    b_vu = jnp.concatenate([v_b, u_b])[None, :].astype(jnp.float32)       # (1, 2D)
    ww = jnp.asarray(aw_w, jnp.bfloat16)                                  # (K, D)
    bw = jnp.asarray(aw_b, jnp.float32)[:, None]                          # (K, 1)
    wc = jnp.transpose(cls_w, (0, 2, 1)).astype(jnp.float32)              # (K, D_inner, C)
    bc = jnp.asarray(cls_b, jnp.float32)                                  # (K, C)
    return (w1, w_vu, b_vu, ww, bw, wc, bc)


def attnmil3_forward(x, kparams, *, block_n=1024, num_cores=None):
    """x: (1, N, feat_d). Returns (outputs (K,C), max (1,C), A_out (1,K,N))."""
    x0 = x[0]                                   # keep native dtype; no pad, no f32 copy
    n, feat_d = x0.shape
    (w1, w_vu, b_vu, ww, bw, wc, bc) = kparams
    k_tok, d_attn = ww.shape
    d_inner = w1.shape[1]

    # Instance tile: exact for small bags, lane-aligned multiple of 128 otherwise.
    if n <= block_n:
        tn = n
        n_blocks = 1
    else:
        assert block_n % 128 == 0, "block_n must be a multiple of 128"
        tn = block_n
        n_blocks = pl.cdiv(n, tn)
    mask_tail = (n % tn) != 0

    # 2-way split across TensorCores (helps v7x megacore; harmless serial loop on 1-TC
    # chips) whenever the block count splits evenly.
    if num_cores is None:
        num_cores = 2 if (n_blocks >= 2 and n_blocks % 2 == 0) else 1
    if n_blocks % num_cores != 0:
        num_cores = 1
    bpc = n_blocks // num_cores
    grid = (num_cores, bpc)

    kernel = partial(attnmil3_kernel, n_valid=n, mask_tail=mask_tail)

    in_specs = [
        pl.BlockSpec((tn, feat_d), lambda c, i: (c * bpc + i, 0)),        # x (streamed)
        pl.BlockSpec((feat_d, d_inner), lambda c, i: (0, 0)),             # w1 (resident)
        pl.BlockSpec((d_inner, 2 * d_attn), lambda c, i: (0, 0)),         # w_vu
        pl.BlockSpec((1, 2 * d_attn), lambda c, i: (0, 0)),               # b_vu
        pl.BlockSpec((k_tok, d_attn), lambda c, i: (0, 0)),               # ww
        pl.BlockSpec((k_tok, 1), lambda c, i: (0, 0)),                    # bw
    ]
    out_specs = (
        pl.BlockSpec((None, k_tok, 1), lambda c, i: (c, 0, 0)),           # m partial
        pl.BlockSpec((None, k_tok, 1), lambda c, i: (c, 0, 0)),           # l partial
        pl.BlockSpec((None, k_tok, d_inner), lambda c, i: (c, 0, 0)),     # acc partial
        pl.BlockSpec((k_tok, tn), lambda c, i: (0, c * bpc + i)),         # A per block
    )
    out_shape = (
        jax.ShapeDtypeStruct((num_cores, k_tok, 1), jnp.float32),
        jax.ShapeDtypeStruct((num_cores, k_tok, 1), jnp.float32),
        jax.ShapeDtypeStruct((num_cores, k_tok, d_inner), jnp.float32),
        jax.ShapeDtypeStruct((k_tok, n), jnp.float32),
    )

    flops = 2 * n * (feat_d * d_inner + d_inner * 2 * d_attn
                     + d_attn * k_tok + k_tok * d_inner)
    transcendentals = n * (2 * d_attn + k_tok)
    bytes_accessed = (x0.size * x0.dtype.itemsize + k_tok * n * 4
                      + w1.size * 2 + w_vu.size * 2 + ww.size * 2)
    cost = pl.CostEstimate(flops=int(flops), transcendentals=int(transcendentals),
                           bytes_accessed=int(bytes_accessed))

    m_out, l_out, acc_out, a_out = pl.pallas_call(
        kernel,
        out_shape=out_shape,
        grid_spec=pltpu.PrefetchScalarGridSpec(
            num_scalar_prefetch=0,
            grid=grid,
            in_specs=in_specs,
            out_specs=out_specs),
        compiler_params=pltpu.CompilerParams(
            # axis 0: independent per-core partials -> parallel (megacore on v7x);
            # axis 1: reduction with carried accumulators -> arbitrary.
            dimension_semantics=("parallel", "arbitrary"),
            # Portable across v5e/v6e/v7x (v7x has only 64 MiB physical VMEM per TC).
            vmem_limit_bytes=48 * 1024 * 1024),
        cost_estimate=cost,
    )(x0, w1, w_vu, b_vu, ww, bw)

    # --- tiny epilogue in plain JAX: log-sum-exp merge of per-core partials + heads ---
    m = m_out[:, :, 0]                                   # (cores, K)
    g = jnp.max(m, axis=0, keepdims=True)                # (1, K)
    scale = jnp.exp(m - g)                               # (cores, K)
    l = jnp.sum(l_out[:, :, 0] * scale, axis=0)          # (K,)
    acc = jnp.sum(acc_out * scale[:, :, None], axis=0)   # (K, D_inner)
    afeat = acc / l[:, None]                             # (K, D_inner)
    outputs = jnp.einsum('kd,kdc->kc', afeat, wc) + bc   # (K, C)
    out_max = jnp.max(outputs, axis=0, keepdims=True)    # (1, C)
    return outputs, out_max, a_out[None]


def reference_forward(x, params):
    x0 = jnp.asarray(x[0], jnp.float32)
    (fc1_w, v_w, v_b, u_w, u_b, aw_w, aw_b, cls_w, cls_b) = params
    K = aw_w.shape[0]
    med = jnp.maximum(x0 @ fc1_w.T, 0.0)
    a_v = jnp.tanh(med @ v_w.T + v_b)
    a_u = jax.nn.sigmoid(med @ u_w.T + u_b)
    A = ((a_v * a_u) @ aw_w.T + aw_b).T
    P = jax.nn.softmax(A, axis=1)
    afeat = P @ med
    outs = jnp.stack([afeat[i] @ cls_w[i].T + cls_b[i] for i in range(K)])
    return outs, outs.max(axis=0)[None], A[None]


if __name__ == "__main__":
    # conf: feat_d=64, D_inner=64, D=128 (module default), n_token=2, n_class=4,
    # n_masked_patch=0.
    FEAT_D, D_INNER, D, K, C = 64, 64, 128, 2, 4

    key = jax.random.PRNGKey(0)
    ks = jax.random.split(key, 10)

    # deterministic synthetic parameters in torch nn.Linear layout (out, in)
    fc1_w = 0.1 * jax.random.normal(ks[1], (D_INNER, FEAT_D), jnp.float32)
    v_w = 0.1 * jax.random.normal(ks[2], (D, D_INNER), jnp.float32)
    v_b = 0.1 * jax.random.normal(ks[3], (D,), jnp.float32)
    u_w = 0.1 * jax.random.normal(ks[4], (D, D_INNER), jnp.float32)
    u_b = 0.1 * jax.random.normal(ks[5], (D,), jnp.float32)
    aw_w = 0.1 * jax.random.normal(ks[6], (K, D), jnp.float32)
    aw_b = 0.1 * jax.random.normal(ks[7], (K,), jnp.float32)
    cls_w = 0.1 * jax.random.normal(ks[8], (K, C, D_INNER), jnp.float32)
    cls_b = 0.1 * jax.random.normal(ks[9], (K, C), jnp.float32)
    params = (fc1_w, v_w, v_b, u_w, u_b, aw_w, aw_b, cls_w, cls_b)

    kparams = prepare_params(params)  # one-time re-layout + bf16 cast (model-load time)

    # Case 1: small bag -> single exact block, one core, no masking.
    # Case 2: tiled bag -> 4 blocks of 512, 2-way core split, ragged tail masking.
    for n_inst, blk in [(300, 1024), (1900, 512)]:
        x = jax.random.normal(ks[0], (1, n_inst, FEAT_D), jnp.float32)
        out, out_max, a_out = attnmil3_forward(x, kparams, block_n=blk)
        jax.block_until_ready((out, out_max, a_out))

        ref_out, ref_max, ref_a = reference_forward(x, params)
        assert out.shape == ref_out.shape and out_max.shape == ref_max.shape
        assert a_out.shape == ref_a.shape
        # bf16 MXU operands with f32 accumulation -> loose tolerances vs f32 reference.
        assert jnp.allclose(out, ref_out, atol=5e-2, rtol=5e-2)
        assert jnp.allclose(out_max, ref_max, atol=5e-2, rtol=5e-2)
        assert jnp.allclose(a_out, ref_a, atol=5e-2, rtol=5e-2)

    print("KERNEL_OK")
</pallas_src>

<mosaic_0001>
module attributes {stable_mosaic.version = 11 : i64} {
  func.func @attnmil3_kernel(%arg0: i32, %arg1: i32, %arg2: memref<300x64xf32, #tpu.memory_space<vmem>>, %arg3: memref<64x64xbf16, #tpu.memory_space<vmem>>, %arg4: memref<64x256xbf16, #tpu.memory_space<vmem>>, %arg5: memref<1x256xf32, #tpu.memory_space<vmem>>, %arg6: memref<2x128xbf16, #tpu.memory_space<vmem>>, %arg7: memref<2x1xf32, #tpu.memory_space<vmem>>, %arg8: memref<1x2x1xf32, #tpu.memory_space<vmem>>, %arg9: memref<1x2x1xf32, #tpu.memory_space<vmem>>, %arg10: memref<1x2x64xf32, #tpu.memory_space<vmem>>, %arg11: memref<2x300xf32, #tpu.memory_space<vmem>>) attributes {dimension_semantics = [#tpu.dimension_semantics<parallel>, #tpu.dimension_semantics<arbitrary>], iteration_bounds = array<i64: 1, 1>, scalar_prefetch = 0 : i64, scratch_operands = 0 : i64, tpu.core_type = #tpu.core_type<tc>, window_params = [{transform_indices = @transform_0, window_bounds = array<i64: 300, 64>}, {pipeline_mode = #tpu.pipeline_mode<synchronous>, transform_indices = @transform_1, window_bounds = array<i64: 64, 64>}, {pipeline_mode = #tpu.pipeline_mode<synchronous>, transform_indices = @transform_2, window_bounds = array<i64: 64, 256>}, {pipeline_mode = #tpu.pipeline_mode<synchronous>, transform_indices = @transform_3, window_bounds = array<i64: 1, 256>}, {pipeline_mode = #tpu.pipeline_mode<synchronous>, transform_indices = @transform_4, window_bounds = array<i64: 2, 128>}, {pipeline_mode = #tpu.pipeline_mode<synchronous>, transform_indices = @transform_5, window_bounds = array<i64: 2, 1>}, {transform_indices = @transform_6, window_bounds = array<i64: 1, 2, 1>}, {transform_indices = @transform_7, window_bounds = array<i64: 1, 2, 1>}, {transform_indices = @transform_8, window_bounds = array<i64: 1, 2, 64>}, {transform_indices = @transform_9, window_bounds = array<i64: 2, 300>}]} {
    %c0_i32 = arith.constant 0 : i32
    %0 = arith.cmpi eq, %arg1, %c0_i32 : i32
    %1 = arith.extui %0 : i1 to i32
    %c0_i32_0 = arith.constant 0 : i32
    %2 = arith.cmpi ne, %1, %c0_i32_0 : i32
    scf.if %2 {
      %cst_39 = arith.constant -1.000000e+30 : f32
      %63 = vector.broadcast %cst_39 : f32 to vector<2x1xf32>
      %c0_40 = arith.constant 0 : index
      %c0_41 = arith.constant 0 : index
      %c0_42 = arith.constant 0 : index
      %64 = vector.load %arg8[%c0_40, %c0_41, %c0_42] : memref<1x2x1xf32, #tpu.memory_space<vmem>>, vector<1x2x1xf32>
      %65 = vector.shape_cast %64 : vector<1x2x1xf32> to vector<2x1xf32>
      %66 = vector.shape_cast %63 : vector<2x1xf32> to vector<1x2x1xf32>
      tpu.vector_store %arg8[%c0_40, %c0_41, %c0_42], %66 {strides = array<i32>} : memref<1x2x1xf32, #tpu.memory_space<vmem>>, vector<1x2x1xf32>,
      %cst_43 = arith.constant 0.000000e+00 : f32
      %67 = vector.broadcast %cst_43 : f32 to vector<2x1xf32>
      %c0_44 = arith.constant 0 : index
      %c0_45 = arith.constant 0 : index
      %c0_46 = arith.constant 0 : index
      %68 = vector.load %arg9[%c0_44, %c0_45, %c0_46] : memref<1x2x1xf32, #tpu.memory_space<vmem>>, vector<1x2x1xf32>
      %69 = vector.shape_cast %68 : vector<1x2x1xf32> to vector<2x1xf32>
      %70 = vector.shape_cast %67 : vector<2x1xf32> to vector<1x2x1xf32>
      tpu.vector_store %arg9[%c0_44, %c0_45, %c0_46], %70 {strides = array<i32>} : memref<1x2x1xf32, #tpu.memory_space<vmem>>, vector<1x2x1xf32>,
      %cst_47 = arith.constant 0.000000e+00 : f32
      %71 = vector.broadcast %cst_47 : f32 to vector<2x64xf32>
      %c0_48 = arith.constant 0 : index
      %c0_49 = arith.constant 0 : index
      %c0_50 = arith.constant 0 : index
      %72 = vector.load %arg10[%c0_48, %c0_49, %c0_50] : memref<1x2x64xf32, #tpu.memory_space<vmem>>, vector<1x2x64xf32>
      %73 = vector.shape_cast %72 : vector<1x2x64xf32> to vector<2x64xf32>
      %74 = vector.shape_cast %71 : vector<2x64xf32> to vector<1x2x64xf32>
      tpu.vector_store %arg10[%c0_48, %c0_49, %c0_50], %74 {strides = array<i32>} : memref<1x2x64xf32, #tpu.memory_space<vmem>>, vector<1x2x64xf32>,
    } else {
    }
    %c0 = arith.constant 0 : index
    %c0_1 = arith.constant 0 : index
    %3 = vector.load %arg2[%c0, %c0_1] : memref<300x64xf32, #tpu.memory_space<vmem>>, vector<300x64xf32>
    %4 = arith.truncf %3 : vector<300x64xf32> to vector<300x64xbf16>
    %c0_2 = arith.constant 0 : index
    %c0_3 = arith.constant 0 : index
    %5 = vector.load %arg3[%c0_2, %c0_3] : memref<64x64xbf16, #tpu.memory_space<vmem>>, vector<64x64xbf16>
    %cst = arith.constant dense<0.000000e+00> : vector<300x64xf32>
    %6 = tpu.matmul %4, %5, %cst {dimension_numbers = #tpu.dot_dimension_numbers<[1], [0], [0], [1], [0, 0, 1, 1], [], []>} : vector<300x64xbf16>, vector<64x64xbf16>, vector<300x64xf32> -> vector<300x64xf32>
    %cst_4 = arith.constant 0.000000e+00 : f32
    %7 = vector.broadcast %cst_4 : f32 to vector<300x64xf32>
    %8 = arith.maximumf %6, %7 : vector<300x64xf32>
    %9 = arith.truncf %8 : vector<300x64xf32> to vector<300x64xbf16>
    %c0_5 = arith.constant 0 : index
    %c0_6 = arith.constant 0 : index
    %10 = vector.load %arg4[%c0_5, %c0_6] : memref<64x256xbf16, #tpu.memory_space<vmem>>, vector<64x256xbf16>
    %cst_7 = arith.constant dense<0.000000e+00> : vector<300x256xf32>
    %11 = tpu.matmul %9, %10, %cst_7 {dimension_numbers = #tpu.dot_dimension_numbers<[1], [0], [0], [1], [0, 0, 1, 1], [], []>} : vector<300x64xbf16>, vector<64x256xbf16>, vector<300x256xf32> -> vector<300x256xf32>
    %c0_8 = arith.constant 0 : index
    %c0_9 = arith.constant 0 : index
    %12 = vector.load %arg5[%c0_8, %c0_9] : memref<1x256xf32, #tpu.memory_space<vmem>>, vector<1x256xf32>
    %13 = vector.broadcast %12 : vector<1x256xf32> to vector<300x256xf32>
    %14 = arith.addf %11, %13 : vector<300x256xf32>
    %15 = vector.extract_strided_slice %14 {offsets = [0, 0], sizes = [300, 128], strides = [1, 1]} : vector<300x256xf32> to vector<300x128xf32>
    %16 = math.tanh %15 : vector<300x128xf32>
    %17 = vector.extract_strided_slice %14 {offsets = [0, 128], sizes = [300, 128], strides = [1, 1]} : vector<300x256xf32> to vector<300x128xf32>
    %18 = arith.negf %17 : vector<300x128xf32>
    %19 = math.exp %18 : vector<300x128xf32>
    %cst_10 = arith.constant 1.000000e+00 : f32
    %20 = vector.broadcast %cst_10 : f32 to vector<300x128xf32>
    %21 = arith.addf %20, %19 : vector<300x128xf32>
    %22 = arith.divf %20, %21 : vector<300x128xf32>
    %23 = arith.mulf %16, %22 : vector<300x128xf32>
    %24 = arith.truncf %23 : vector<300x128xf32> to vector<300x128xbf16>
    %c0_11 = arith.constant 0 : index
    %c0_12 = arith.constant 0 : index
    %25 = vector.load %arg6[%c0_11, %c0_12] : memref<2x128xbf16, #tpu.memory_space<vmem>>, vector<2x128xbf16>
    %cst_13 = arith.constant dense<0.000000e+00> : vector<2x300xf32>
    %26 = tpu.matmul %25, %24, %cst_13 {dimension_numbers = #tpu.dot_dimension_numbers<[1], [1], [0], [0], [0, 0, 1, 0], [], []>} : vector<2x128xbf16>, vector<300x128xbf16>, vector<2x300xf32> -> vector<2x300xf32>
    %c0_14 = arith.constant 0 : index
    %c0_15 = arith.constant 0 : index
    %27 = vector.load %arg7[%c0_14, %c0_15] : memref<2x1xf32, #tpu.memory_space<vmem>>, vector<2x1xf32>
    %28 = vector.broadcast %27 : vector<2x1xf32> to vector<2x300xf32>
    %29 = arith.addf %26, %28 : vector<2x300xf32>
    %c0_16 = arith.constant 0 : index
    %c0_17 = arith.constant 0 : index
    %30 = vector.load %arg11[%c0_16, %c0_17] : memref<2x300xf32, #tpu.memory_space<vmem>>, vector<2x300xf32>
    tpu.vector_store %arg11[%c0_16, %c0_17], %29 {strides = array<i32>} : memref<2x300xf32, #tpu.memory_space<vmem>>, vector<2x300xf32>,
    %c0_18 = arith.constant 0 : index
    %c0_19 = arith.constant 0 : index
    %c0_20 = arith.constant 0 : index
    %31 = vector.load %arg8[%c0_18, %c0_19, %c0_20] : memref<1x2x1xf32, #tpu.memory_space<vmem>>, vector<1x2x1xf32>
    %32 = vector.shape_cast %31 : vector<1x2x1xf32> to vector<2x1xf32>
    %cst_21 = arith.constant dense<0xFF800000> : vector<2xf32>
    %33 = vector.multi_reduction <maximumf>, %29, %cst_21 [1] : vector<2x300xf32> to vector<2xf32>
    %34 = vector.shape_cast %33 : vector<2xf32> to vector<2x1xf32>
    %35 = arith.maximumf %32, %34 : vector<2x1xf32>
    %36 = arith.subf %32, %35 : vector<2x1xf32>
    %37 = math.exp %36 : vector<2x1xf32>
    %38 = vector.broadcast %35 : vector<2x1xf32> to vector<2x300xf32>
    %39 = arith.subf %29, %38 : vector<2x300xf32>
    %40 = math.exp %39 : vector<2x300xf32>
    %c0_22 = arith.constant 0 : index
    %c0_23 = arith.constant 0 : index
    %c0_24 = arith.constant 0 : index
    %41 = vector.load %arg9[%c0_22, %c0_23, %c0_24] : memref<1x2x1xf32, #tpu.memory_space<vmem>>, vector<1x2x1xf32>
    %42 = vector.shape_cast %41 : vector<1x2x1xf32> to vector<2x1xf32>
    %43 = arith.mulf %37, %42 : vector<2x1xf32>
    %cst_25 = arith.constant dense<0.000000e+00> : vector<2xf32>
    %44 = vector.multi_reduction <add>, %40, %cst_25 [1] : vector<2x300xf32> to vector<2xf32>
    %45 = vector.shape_cast %44 : vector<2xf32> to vector<2x1xf32>
    %46 = arith.addf %43, %45 : vector<2x1xf32>
    %c0_26 = arith.constant 0 : index
    %c0_27 = arith.constant 0 : index
    %c0_28 = arith.constant 0 : index
    %47 = vector.load %arg9[%c0_26, %c0_27, %c0_28] : memref<1x2x1xf32, #tpu.memory_space<vmem>>, vector<1x2x1xf32>
    %48 = vector.shape_cast %47 : vector<1x2x1xf32> to vector<2x1xf32>
    %49 = vector.shape_cast %46 : vector<2x1xf32> to vector<1x2x1xf32>
    tpu.vector_store %arg9[%c0_26, %c0_27, %c0_28], %49 {strides = array<i32>} : memref<1x2x1xf32, #tpu.memory_space<vmem>>, vector<1x2x1xf32>,
    %c0_29 = arith.constant 0 : index
    %c0_30 = arith.constant 0 : index
    %c0_31 = arith.constant 0 : index
    %50 = vector.load %arg10[%c0_29, %c0_30, %c0_31] : memref<1x2x64xf32, #tpu.memory_space<vmem>>, vector<1x2x64xf32>
    %51 = vector.shape_cast %50 : vector<1x2x64xf32> to vector<2x64xf32>
    %52 = vector.broadcast %37 : vector<2x1xf32> to vector<2x64xf32>
    %53 = arith.mulf %52, %51 : vector<2x64xf32>
    %54 = arith.truncf %40 : vector<2x300xf32> to vector<2x300xbf16>
    %cst_32 = arith.constant dense<0.000000e+00> : vector<2x64xf32>
    %55 = tpu.matmul %54, %9, %cst_32 {dimension_numbers = #tpu.dot_dimension_numbers<[1], [0], [0], [1], [0, 0, 1, 1], [], []>} : vector<2x300xbf16>, vector<300x64xbf16>, vector<2x64xf32> -> vector<2x64xf32>
    %56 = arith.addf %53, %55 : vector<2x64xf32>
    %c0_33 = arith.constant 0 : index
    %c0_34 = arith.constant 0 : index
    %c0_35 = arith.constant 0 : index
    %57 = vector.load %arg10[%c0_33, %c0_34, %c0_35] : memref<1x2x64xf32, #tpu.memory_space<vmem>>, vector<1x2x64xf32>
    %58 = vector.shape_cast %57 : vector<1x2x64xf32> to vector<2x64xf32>
    %59 = vector.shape_cast %56 : vector<2x64xf32> to vector<1x2x64xf32>
    tpu.vector_store %arg10[%c0_33, %c0_34, %c0_35], %59 {strides = array<i32>} : memref<1x2x64xf32, #tpu.memory_space<vmem>>, vector<1x2x64xf32>,
    %c0_36 = arith.constant 0 : index
    %c0_37 = arith.constant 0 : index
    %c0_38 = arith.constant 0 : index
    %60 = vector.load %arg8[%c0_36, %c0_37, %c0_38] : memref<1x2x1xf32, #tpu.memory_space<vmem>>, vector<1x2x1xf32>
    %61 = vector.shape_cast %60 : vector<1x2x1xf32> to vector<2x1xf32>
    %62 = vector.shape_cast %35 : vector<2x1xf32> to vector<1x2x1xf32>
    tpu.vector_store %arg8[%c0_36, %c0_37, %c0_38], %62 {strides = array<i32>} : memref<1x2x1xf32, #tpu.memory_space<vmem>>, vector<1x2x1xf32>,
    return
  }
  func.func @transform_0(%arg0: i32, %arg1: i32) -> (i32, i32) {
    %c1_i32 = arith.constant 1 : i32
    %0 = arith.muli %arg0, %c1_i32 : i32
    %1 = arith.addi %0, %arg1 : i32
    %c0_i32 = arith.constant 0 : i32
    %c0_i32_0 = arith.constant 0 : i32
    return %1, %c0_i32 : i32, i32
  }
  func.func @transform_1(%arg0: i32, %arg1: i32) -> (i32, i32) {
    %c0_i32 = arith.constant 0 : i32
    %c0_i32_0 = arith.constant 0 : i32
    %c0_i32_1 = arith.constant 0 : i32
    return %c0_i32, %c0_i32_0 : i32, i32
  }
  func.func @transform_2(%arg0: i32, %arg1: i32) -> (i32, i32) {
    %c0_i32 = arith.constant 0 : i32
    %c0_i32_0 = arith.constant 0 : i32
    %c0_i32_1 = arith.constant 0 : i32
    return %c0_i32, %c0_i32_0 : i32, i32
  }
  func.func @transform_3(%arg0: i32, %arg1: i32) -> (i32, i32) {
    %c0_i32 = arith.constant 0 : i32
    %c0_i32_0 = arith.constant 0 : i32
    %c0_i32_1 = arith.constant 0 : i32
    return %c0_i32, %c0_i32_0 : i32, i32
  }
  func.func @transform_4(%arg0: i32, %arg1: i32) -> (i32, i32) {
    %c0_i32 = arith.constant 0 : i32
    %c0_i32_0 = arith.constant 0 : i32
    %c0_i32_1 = arith.constant 0 : i32
    return %c0_i32, %c0_i32_0 : i32, i32
  }
  func.func @transform_5(%arg0: i32, %arg1: i32) -> (i32, i32) {
    %c0_i32 = arith.constant 0 : i32
    %c0_i32_0 = arith.constant 0 : i32
    %c0_i32_1 = arith.constant 0 : i32
    return %c0_i32, %c0_i32_0 : i32, i32
  }
  func.func @transform_6(%arg0: i32, %arg1: i32) -> (i32, i32, i32) {
    %c0_i32 = arith.constant 0 : i32
    %c0_i32_0 = arith.constant 0 : i32
    %c0_i32_1 = arith.constant 0 : i32
    return %arg0, %c0_i32, %c0_i32_0 : i32, i32, i32
  }
  func.func @transform_7(%arg0: i32, %arg1: i32) -> (i32, i32, i32) {
    %c0_i32 = arith.constant 0 : i32
    %c0_i32_0 = arith.constant 0 : i32
    %c0_i32_1 = arith.constant 0 : i32
    return %arg0, %c0_i32, %c0_i32_0 : i32, i32, i32
  }
  func.func @transform_8(%arg0: i32, %arg1: i32) -> (i32, i32, i32) {
    %c0_i32 = arith.constant 0 : i32
    %c0_i32_0 = arith.constant 0 : i32
    %c0_i32_1 = arith.constant 0 : i32
    return %arg0, %c0_i32, %c0_i32_0 : i32, i32, i32
  }
  func.func @transform_9(%arg0: i32, %arg1: i32) -> (i32, i32) {
    %c1_i32 = arith.constant 1 : i32
    %0 = arith.muli %arg0, %c1_i32 : i32
    %1 = arith.addi %0, %arg1 : i32
    %c0_i32 = arith.constant 0 : i32
    %c0_i32_0 = arith.constant 0 : i32
    return %c0_i32, %1 : i32, i32
  }
}

</mosaic_0001>

<bundles_post_ra>
// kernel: tpu_custom_call.1
= control target key start
LH: loop header
LB: loop body
LE: loop exit
PB: predicated region body
PF: predicated region fallthrough
CT: control target
= control target key end

     0   :  { %15 = vsyncpa [#allocation3], 0  ;;  %s3342_s0 = inlined_call_operand.vmem [shape: f32[300,64], index: 0, kind: input, shape index: {}]   ;;  %s3343_s1 = inlined_call_operand.vmem [shape: bf16[64,64], index: 1, kind: input, shape index: {}]   ;;  %s3344_s2 = inlined_call_operand.vmem [shape: bf16[64,256], index: 2, kind: input, shape index: {}]   ;;  %s3345_s3 = inlined_call_operand.vmem [shape: f32[1,256], index: 3, kind: input, shape index: {}]   ;;  %s3346_s4 = inlined_call_operand.vmem [shape: bf16[2,128], index: 4, kind: input, shape index: {}]   ;;  %s3347_s5 = inlined_call_operand.vmem [shape: f32[2,1], index: 5, kind: input, shape index: {}]   ;;  %s3348_s6 = inlined_call_operand.vmem [shape: f32[1,2,1], index: 6, kind: output, shape index: {0}]   ;;  %s3349_s7 = inlined_call_operand.vmem [shape: f32[1,2,1], index: 7, kind: output, shape index: {1}]   ;;  %s3350_s8 = inlined_call_operand.hbm [shape: f32[1,2,64], index: 8, kind: output, shape index: {2}]   ;;  %s3351_s9 = inlined_call_operand.hbm [shape: f32[2,300], index: 9, kind: output, shape index: {3}]  }
   0x1   :  { %v1864_v0 = vld [vmem:[%s3343_s1 + $0x18] sm:$0xff]  ;;  %v1863_v1 = vld [vmem:[%s3343_s1 + $0x10] sm:$0xff] }
   0x2   :  { %214 = vmatpush.bf16.msra.mxu0 %v1864_v0 }
   0x3   :  { %16 = vsyncpa [#allocation5], 0  ;;  %v1862_v2 = vld [vmem:[%s3343_s1 + $0x8] sm:$0xff]  ;;  %v1861_v3 = vld [vmem:[%s3343_s1] sm:$0xff]  ;;  %vm152_vm0 = vcmask 523264   ;;  %s1693_s1 = sshll.u32 %s3351_s9, 4  ;;  %s1694_s1 = int_to_ptr.hbm [resolvable:$true] %s1693_s1 }
   0x4   :  { %v63_v4 = vld [vmem:[%s3342_s0] sm:$0xff]  ;;  %v64_v5 = vld [vmem:[%s3342_s0 + $0x8] sm:$0xff]  ;;  %v65_v7 = vld [vmem:[%s3342_s0 + $0x10] sm:$0xff]  ;;  %s2172_s9 = smov [#allocation2]  }
   0x5   :  { %v101_v6 = vpack.c.bf16 %v64_v5, %v63_v4  ;;  %v66_v8 = vld [vmem:[%s3342_s0 + $0x18] sm:$0xff]  ;;  %v67_v10 = vld [vmem:[%s3342_s0 + $0x20] sm:$0xff]  ;;  %v68_v11 = vld [vmem:[%s3342_s0 + $0x28] sm:$0xff]  ;;  %s1676_s29 = sshll.u32 %s2172_s9, 4  ;;  %s1677_s29 = int_to_ptr.vmem [resolvable:$true] %s1676_s29 }
   0x6   :  { %215 = vmatpush.bf16.msra.mxu0 %v1863_v1  ;;  %v102_v9 = vpack.c.bf16 %v66_v8, %v65_v7  ;;  %v103_v12 = vpack.c.bf16 %v68_v11, %v67_v10  ;;  %v69_v13 = vld [vmem:[%s3342_s0 + $0x30] sm:$0xff]  ;;  %v70_v14 = vld [vmem:[%s3342_s0 + $0x38] sm:$0xff]  ;;  %v71_v16 = vld [vmem:[%s3342_s0 + $0x40] sm:$0xff] }
   0x7   :  { %v104_v15 = vpack.c.bf16 %v70_v14, %v69_v13  ;;  %v72_v17 = vld [vmem:[%s3342_s0 + $0x48] sm:$0xff]  ;;  %v73_v19 = vld [vmem:[%s3342_s0 + $0x50] sm:$0xff]  ;;  %v74_v20 = vld [vmem:[%s3342_s0 + $0x58] sm:$0xff] }
   0x8   :  { %v105_v18 = vpack.c.bf16 %v72_v17, %v71_v16  ;;  %v106_v21 = vpack.c.bf16 %v74_v20, %v73_v19  ;;  %v1778_v22 = vld [vmem:[%s3344_s2 + $0x30] sm:$0xf]  ;;  %v1872_v23 = vld [vmem:[%s3344_s2 + $0x34] sm:$0xf0]  ;;  %v1871_v24 = vld [vmem:[%s3344_s2 + $0x34] sm:$0xf] }
   0x9   :  { %v1779_v25 = vor.u32 %v1872_v23, %v1778_v22  ;;  %v1780_v26 = vld [vmem:[%s3344_s2 + $0x38] sm:$0xf0]  ;;  %v75_v28 = vld [vmem:[%s3342_s0 + $0x60] sm:$0xff]  ;;  %v76_v29 = vld [vmem:[%s3342_s0 + $0x68] sm:$0xff] }
   0xa   :  { %216 = vmatpush.bf16.msra.mxu0 %v1862_v2  ;;  %v1783_v27 = vor.u32 %v1871_v24, %v1780_v26  ;;  %v107_v30 = vpack.c.bf16 %v76_v29, %v75_v28  ;;  %v1770_v31 = vld [vmem:[%s3344_s2 + $0x20] sm:$0xf]  ;;  %v1870_v32 = vld [vmem:[%s3344_s2 + $0x24] sm:$0xf0]  ;;  %v1869_v33 = vld [vmem:[%s3344_s2 + $0x24] sm:$0xf] }
   0xb   :  { %486 = vmatpush.bf16.msra.mxu1 %v1779_v25  ;;  %v1771_v34 = vor.u32 %v1870_v32, %v1770_v31  ;;  %v1772_v35 = vld [vmem:[%s3344_s2 + $0x28] sm:$0xf0]  ;;  %v1762_v37 = vld [vmem:[%s3344_s2 + $0x10] sm:$0xf]  ;;  %v1868_v38 = vld [vmem:[%s3344_s2 + $0x14] sm:$0xf0] }
   0xc   :  { %590 = vmatpush.bf16.msra.mxu2 %v1783_v27  ;;  %v1775_v36 = vor.u32 %v1869_v33, %v1772_v35  ;;  %v1867_v39 = vld [vmem:[%s3344_s2 + $0x14] sm:$0xf]  ;;  %v1763_v40 = vor.u32 %v1868_v38, %v1762_v37  ;;  %v1764_v41 = vld [vmem:[%s3344_s2 + $0x18] sm:$0xf0]  ;;  %v1754_v43 = vld [vmem:[%s3344_s2] sm:$0xf] }
   0xd   :  { %v1767_v42 = vor.u32 %v1867_v39, %v1764_v41  ;;  %v1866_v44 = vld [vmem:[%s3344_s2 + $0x4] sm:$0xf0]  ;;  %v1865_v45 = vld [vmem:[%s3344_s2 + $0x4] sm:$0xf]  ;;  %v1756_v47 = vld [vmem:[%s3344_s2 + $0x8] sm:$0xf0] }
   0xe   :  { %217 = vmatpush.bf16.msra.mxu0 %v1861_v3  ;;  %v1755_v46 = vor.u32 %v1866_v44, %v1754_v43  ;;  %v1759_v48 = vor.u32 %v1865_v45, %v1756_v47  ;;  %v77_v49 = vld [vmem:[%s3342_s0 + $0x70] sm:$0xff]  ;;  %v78_v50 = vld [vmem:[%s3342_s0 + $0x78] sm:$0xff]  ;;  %v79_v52 = vld [vmem:[%s3342_s0 + $0x80] sm:$0xff] }
   0xf   :  { %487 = vmatpush.bf16.msra.mxu1 %v1771_v34  ;;  %v108_v51 = vpack.c.bf16 %v78_v50, %v77_v49  ;;  %v80_v53 = vld [vmem:[%s3342_s0 + $0x88] sm:$0xff]  ;;  %v81_v60 = vld [vmem:[%s3342_s0 + $0x90] sm:$0xff]  ;;  %v82_v61 = vld [vmem:[%s3342_s0 + $0x98] sm:$0xff] }
  0x10   :  { %591 = vmatpush.bf16.msra.mxu2 %v1775_v36  ;;  %v109_v54 = vpack.c.bf16 %v80_v53, %v79_v52  ;;  %v110_v62 = vpack.c.bf16 %v82_v61, %v81_v60  ;;  %v83_v4 = vld [vmem:[%s3342_s0 + $0xa0] sm:$0xff]  ;;  %v84_v5 = vld [vmem:[%s3342_s0 + $0xa8] sm:$0xff]  ;;  %v86_v13 = vld [vmem:[%s3342_s0 + $0xb8] sm:$0xff] }
  0x11   :  { %1733 = vmatmul.msk.bf16.vlgmr.msra.gmra.mxu0 %vm152_vm0, %v101_v6  ;;  %v111_v6 = vpack.c.bf16 %v84_v5, %v83_v4  ;;  %v87_v20 = vld [vmem:[%s3342_s0 + $0xc0] sm:$0xff]  ;;  %v89_v28 = vld [vmem:[%s3342_s0 + $0xd0] sm:$0xff]  ;;  %v90_v29 = vld [vmem:[%s3342_s0 + $0xd8] sm:$0xff] }
  0x12   :  { %v91_v36 = vld [vmem:[%s3342_s0 + $0xe0] sm:$0xff]  ;;  %v92_v37 = vld [vmem:[%s3342_s0 + $0xe8] sm:$0xff]  ;;  %v93_v44 = vld [vmem:[%s3342_s0 + $0xf0] sm:$0xff] }
  0x13   :  { %488 = vmatpush.bf16.msra.mxu1 %v1763_v40  ;;  %v115_v38 = vpack.c.bf16 %v92_v37, %v91_v36  ;;  %v94_v45 = vld [vmem:[%s3342_s0 + $0xf8] sm:$0xff]  ;;  %v95_v52 = vld [vmem:[%s3342_s0 + $0x100] sm:$0xff]  ;;  %v96_v53 = vld [vmem:[%s3342_s0 + $0x108] sm:$0xff] }
  0x14   :  { %592 = vmatpush.bf16.msra.mxu2 %v1767_v42 }
  0x17   :  { %489 = vmatpush.bf16.msra.mxu1 %v1755_v46  ;;  %v116_v46 = vpack.c.bf16 %v94_v45, %v93_v44 }
  0x18   :  { %593 = vmatpush.bf16.msra.mxu2 %v1759_v48 }
  0x21   :  { %1734 = vmatmul.msk.bf16.gmra.mxu0 %vm152_vm0, %v102_v9 }
  0x31   :  { %1735 = vmatmul.msk.bf16.gmra.mxu0 %vm152_vm0, %v103_v12  ;;  %v85_v12 = vld [vmem:[%s3342_s0 + $0xb0] sm:$0xff] }
  0x32   :  { %v112_v14 = vpack.c.bf16 %v86_v13, %v85_v12 }
  0x41   :  { %1736 = vmatmul.msk.bf16.gmra.mxu0 %vm152_vm0, %v104_v15 }
  0x51   :  { %1737 = vmatmul.msk.bf16.gmra.mxu0 %vm152_vm0, %v105_v18 }
  0x61   :  { %1738 = vmatmul.msk.bf16.gmra.mxu0 %vm152_vm0, %v106_v21  ;;  %v88_v21 = vld [vmem:[%s3342_s0 + $0xc8] sm:$0xff] }
  0x62   :  { %v113_v22 = vpack.c.bf16 %v88_v21, %v87_v20  ;;  %v99_v21 = vld [vmem:[%s3342_s0 + $0x120] sm:$0xff] }
  0x71   :  { %1739 = vmatmul.msk.bf16.gmra.mxu0 %vm152_vm0, %v107_v30  ;;  %v114_v30 = vpack.c.bf16 %v90_v29, %v89_v28 }
  0x81   :  { %1740 = vmatmul.msk.bf16.gmra.mxu0 %vm152_vm0, %v108_v51 }
  0x8e   :  { %v219_v55 = vpop.f32.mrf.mxu0 }
  0x8f   :  { %v314_v57 = vmax.f32 %v219_v55, 0.0 }
  0x91   :  { %1741 = vmatmul.msk.bf16.gmra.mxu0 %vm152_vm0, %v109_v54  ;;  %v117_v54 = vpack.c.bf16 %v96_v53, %v95_v52 }
  0x96   :  { %v221_v56 = vpop.f32.mrf.mxu0 }
  0x97   :  { %v315_v58 = vmax.f32 %v221_v56, 0.0 }
  0x99   :  { %v2346_v59 = vpack.c.bf16 %v315_v58, %v314_v57 }
  0x9b   :  { %3364 = vst [vmem:[#allocation8_spill] sm:$0xff] %v2346_v59  ;;  %1784 = vmatmul.msk.bf16.vlgmr.msra.gmra.mxu1 %vm152_vm0, %v2346_v59  ;;  %1803 = vmatmul.msk.bf16.vlgmr.msra.gmra.mxu2 %vm152_vm0, %v2346_v59 }
  0x9e   :  { %v224_v63 = vpop.f32.mrf.mxu0 }
  0x9f   :  { %v316_v1 = vmax.f32 %v224_v63, 0.0  ;;  %v97_v63 = vld [vmem:[%s3342_s0 + $0x110] sm:$0xff] }
  0xa1   :  { %1742 = vmatmul.msk.bf16.gmra.mxu0 %vm152_vm0, %v110_v62  ;;  %v379_v62 = vld [vmem:[%s3345_s3] sm:$0x3]  ;;  %s1678_s3 = sshll.u32 %s3350_s8, 4  ;;  %s1679_s3 = int_to_ptr.hbm [resolvable:$true] %s1678_s3 }
  0xa6   :  { %v226_v0 = vpop.f32.mrf.mxu0 }
  0xa7   :  { %v317_v2 = vmax.f32 %v226_v0, 0.0  ;;  %v98_v0 = vld [vmem:[%s3342_s0 + $0x118] sm:$0xff] }
  0xa9   :  { %v2359_v3 = vpack.c.bf16 %v317_v2, %v316_v1  ;;  %v2465_v1 = vperm.slane %v379_v62, 1  ;;  %v118_v2 = vpack.c.bf16 %v98_v0, %v97_v63 }
  0xab   :  { %3365 = vst [vmem:[#allocation9_spill] sm:$0xff] %v2359_v3  ;;  %1785 = vmatmul.msk.bf16.gmra.mxu1 %vm152_vm0, %v2359_v3  ;;  %1804 = vmatmul.msk.bf16.gmra.mxu2 %vm152_vm0, %v2359_v3 }
  0xae   :  { %v229_v7 = vpop.f32.mrf.mxu0 }
  0xaf   :  { %v318_v9 = vmax.f32 %v229_v7, 0.0 }
  0xb1   :  { %1743 = vmatmul.msk.bf16.gmra.mxu0 %vm152_vm0, %v111_v6 }
  0xb6   :  { %v231_v8 = vpop.f32.mrf.mxu0 }
  0xb7   :  { %v319_v10 = vmax.f32 %v231_v8, 0.0 }
  0xb9   :  { %v2372_v11 = vpack.c.bf16 %v319_v10, %v318_v9 }
  0xbb   :  { %1786 = vmatmul.msk.bf16.gmra.mxu1 %vm152_vm0, %v2372_v11  ;;  %1805 = vmatmul.msk.bf16.gmra.mxu2 %vm152_vm0, %v2372_v11 }
  0xbe   :  { %v234_v15 = vpop.f32.mrf.mxu0 }
  0xbf   :  { %v320_v17 = vmax.f32 %v234_v15, 0.0 }
  0xc1   :  { %1744 = vmatmul.msk.bf16.gmra.mxu0 %vm152_vm0, %v112_v14 }
  0xc6   :  { %v236_v16 = vpop.f32.mrf.mxu0 }
  0xc7   :  { %v321_v18 = vmax.f32 %v236_v16, 0.0 }
  0xc9   :  { %v2385_v19 = vpack.c.bf16 %v321_v18, %v320_v17 }
  0xcb   :  { %1787 = vmatmul.msk.bf16.gmra.mxu1 %vm152_vm0, %v2385_v19  ;;  %1806 = vmatmul.msk.bf16.gmra.mxu2 %vm152_vm0, %v2385_v19 }
  0xce   :  { %v239_v23 = vpop.f32.mrf.mxu0 }
  0xcf   :  { %v322_v25 = vmax.f32 %v239_v23, 0.0 }
  0xd1   :  { %1745 = vmatmul.msk.bf16.gmra.mxu0 %vm152_vm0, %v113_v22  ;;  %v100_v22 = vld [vmem:[%s3342_s0 + $0x128] sm:$0xf] }
  0xd2   :  { %v119_v23 = vpack.c.bf16 %v100_v22, %v99_v21 }
  0xd6   :  { %v241_v24 = vpop.f32.mrf.mxu0 }
  0xd7   :  { %v323_v26 = vmax.f32 %v241_v24, 0.0  ;;  %v2484_v24 = vperm.slane %v379_v62, 0 }
  0xd9   :  { %v2398_v27 = vpack.c.bf16 %v323_v26, %v322_v25 }
  0xdb   :  { %1788 = vmatmul.msk.bf16.gmra.mxu1 %vm152_vm0, %v2398_v27  ;;  %1807 = vmatmul.msk.bf16.gmra.mxu2 %vm152_vm0, %v2398_v27 }
  0xde   :  { %v244_v31 = vpop.f32.mrf.mxu0 }
  0xdf   :  { %v324_v33 = vmax.f32 %v244_v31, 0.0 }
  0xe1   :  { %1746 = vmatmul.msk.bf16.gmra.mxu0 %vm152_vm0, %v114_v30 }
  0xe6   :  { %v246_v32 = vpop.f32.mrf.mxu0 }
  0xe7   :  { %v325_v34 = vmax.f32 %v246_v32, 0.0 }
  0xe9   :  { %v2411_v35 = vpack.c.bf16 %v325_v34, %v324_v33 }
  0xeb   :  { %1789 = vmatmul.msk.bf16.gmra.mxu1 %vm152_vm0, %v2411_v35  ;;  %1808 = vmatmul.msk.bf16.gmra.mxu2 %vm152_vm0, %v2411_v35 }
  0xee   :  { %v249_v39 = vpop.f32.mrf.mxu0 }
  0xef   :  { %v326_v41 = vmax.f32 %v249_v39, 0.0 }
  0xf1   :  { %1747 = vmatmul.msk.bf16.gmra.mxu0 %vm152_vm0, %v115_v38 }
  0xf6   :  { %v251_v40 = vpop.f32.mrf.mxu0 }
  0xf7   :  { %v327_v42 = vmax.f32 %v251_v40, 0.0 }
  0xf9   :  { %v2424_v43 = vpack.c.bf16 %v327_v42, %v326_v41 }
  0xfb   :  { %1790 = vmatmul.msk.bf16.gmra.mxu1 %vm152_vm0, %v2424_v43  ;;  %1809 = vmatmul.msk.bf16.gmra.mxu2 %vm152_vm0, %v2424_v43 }
  0xfe   :  { %v254_v47 = vpop.f32.mrf.mxu0 }
  0xff   :  { %v328_v49 = vmax.f32 %v254_v47, 0.0 }
 0x101   :  { %1748 = vmatmul.msk.bf16.gmra.mxu0 %vm152_vm0, %v116_v46 }
 0x106   :  { %v256_v48 = vpop.f32.mrf.mxu0 }
 0x107   :  { %v329_v50 = vmax.f32 %v256_v48, 0.0 }
 0x109   :  { %v2437_v51 = vpack.c.bf16 %v329_v50, %v328_v49 }
 0x10b   :  { %1791 = vmatmul.msk.bf16.gmra.mxu1 %vm152_vm0, %v2437_v51  ;;  %1810 = vmatmul.msk.bf16.gmra.mxu2 %vm152_vm0, %v2437_v51 }
 0x10e   :  { %v259_v55 = vpop.f32.mrf.mxu0 }
 0x10f   :  { %v330_v57 = vmax.f32 %v259_v55, 0.0 }
 0x111   :  { %1749 = vmatmul.msk.bf16.gmra.mxu0 %vm152_vm0, %v117_v54 }
 0x116   :  { %v261_v56 = vpop.f32.mrf.mxu0 }
 0x117   :  { %v331_v58 = vmax.f32 %v261_v56, 0.0 }
 0x118   :  { %v491_v60 = vpop.f32.mrf.mxu1 }
 0x119   :  { %v2450_v61 = vpack.c.bf16 %v331_v58, %v330_v57  ;;  %v492_v33 = vadd.f32 %v491_v60, %v2484_v24 }
 0x11b   :  { %3366 = vst [vmem:[#allocation10_spill] sm:$0xff] %v2450_v61  ;;  %1792 = vmatmul.msk.bf16.gmra.mxu1 %vm152_vm0, %v2450_v61  ;;  %1811 = vmatmul.msk.bf16.gmra.mxu2 %vm152_vm0, %v2450_v61 }
 0x11e   :  { %v264_v4 = vpop.f32.mrf.mxu0  ;;  %v595_v5 = vpop.f32.mrf.mxu2 }
 0x11f   :  { %v596_v6 = vadd.f32 %v595_v5, %v2465_v1  ;;  %v332_v12 = vmax.f32 %v264_v4, 0.0 }
 0x120   :  { %v493_v7 = vpop.f32.mrf.mxu1 }
 0x121   :  { %v1822_v8 = vmul.f32 -1.442695, %v596_v6  ;;  %1750 = vmatmul.msk.bf16.gmra.mxu0 %vm152_vm0, %v118_v2  ;;  %v494_v54 = vadd.f32 %v493_v7, %v2484_v24 }
 0x123   :  { %1880 = vpow2.f32 %v1822_v8 }
 0x126   :  { %v266_v9 = vpop.f32.mrf.mxu0  ;;  %v597_v10 = vpop.f32.mrf.mxu2 }
 0x127   :  { %v333_v13 = vmax.f32 %v266_v9, 0.0  ;;  %v598_v14 = vadd.f32 %v597_v10, %v2465_v1 }
 0x128   :  { %v2470_v15 = vpop.f32.mrf.mxu1 }
 0x129   :  { %v1881_v16 = vpop.eup %1880  ;;  %v2472_v17 = vpack.c.bf16 %v333_v13, %v332_v12  ;;  %v1823_v18 = vmul.f32 -1.442695, %v598_v14 }
 0x12a   :  { %v842_v20 = vadd.f32 1.0, %v1881_v16  ;;  %v497_v16 = vadd.f32 %v2470_v15, %v2484_v24 }
 0x12b   :  { %3367 = vst [vmem:[#allocation11_spill] sm:$0xff] %v2472_v17  ;;  %1882 = vpow2.f32 %v1823_v18  ;;  %1793 = vmatmul.msk.bf16.gmra.mxu1 %vm152_vm0, %v2472_v17  ;;  %1812 = vmatmul.msk.bf16.gmra.mxu2 %vm152_vm0, %v2472_v17 }
 0x12c   :  { %1884 = vrcp.f32 %v842_v20  ;;  %v891_v41 = vand.u32 2147483648, %v842_v20  ;;  %v889_v47 = vand.u32 2147483647, %v842_v20  ;;  %vm885_vm2 = vweird.f32 %v842_v20 }
 0x12e   :  { %v269_v25 = vpop.f32.mrf.mxu0  ;;  %v600_v26 = vpop.f32.mrf.mxu2  ;;  %v892_v57 = vor.u32 1.1754944e-38, %v891_v41  ;;  %vm890_vm4 = vcmp.eq.f32.partialorder %v889_v47, 8.507059e+37 }
 0x12f   :  { %v601_v28 = vadd.f32 %v600_v26, %v2465_v1  ;;  %v334_v38 = vmax.f32 %v269_v25, 0.0 }
 0x130   :  { %v2487_v29 = vpop.f32.mrf.mxu1 }
 0x131   :  { %v1883_v30 = vpop.eup %1882  ;;  %v1824_v31 = vmul.f32 -1.442695, %v601_v28  ;;  %1751 = vmatmul.msk.bf16.gmra.mxu0 %vm152_vm0, %v119_v23  ;;  %v499_v47 = vadd.f32 %v2487_v29, %v2484_v24 }
 0x132   :  { %v1885_v32 = vpop.eup %1884  ;;  %v843_v34 = vadd.f32 1.0, %v1883_v30 }
 0x133   :  { %1886 = vpow2.f32 %v1824_v31  ;;  %v881_v36 = vmul.f32 %v1885_v32, %v842_v20  ;;  %vm886_vm1 = vweird.f32 %v1885_v32 }
 0x134   :  { %1888 = vrcp.f32 %v843_v34  ;;  %vm887_vm3 = vmor %vm885_vm2, %vm886_vm1  ;;  %v906_v7 = vand.u32 2147483648, %v843_v34  ;;  %v904_v9 = vand.u32 2147483647, %v843_v34  ;;  %vm900_vm6 = vweird.f32 %v843_v34 }
 0x135   :  { %v882_v37 = vsub.f32 1.0, %v881_v36  ;;  %1890 = vtanh.f32 %v492_v33 }
 0x136   :  { %v271_v39 = vpop.f32.mrf.mxu0  ;;  %v602_v40 = vpop.f32.mrf.mxu2  ;;  %v907_v22 = vor.u32 1.1754944e-38, %v906_v7  ;;  %vm905_vm8 = vcmp.eq.f32.partialorder %v904_v9, 8.507059e+37 }
 0x137   :  { %v335_v42 = vmax.f32 %v271_v39, 0.0  ;;  %v603_v44 = vadd.f32 %v602_v40, %v2465_v1  ;;  %v883_v45 = vmul.f32 %v1885_v32, %v882_v37 }
 0x138   :  { %v2492_v46 = vpop.f32.mrf.mxu1 }
 0x139   :  { %v1887_v48 = vpop.eup %1886  ;;  %v2494_v49 = vpack.c.bf16 %v335_v42, %v334_v38  ;;  %v1825_v50 = vmul.f32 -1.442695, %v603_v44  ;;  %v884_v52 = vadd.f32 %v1885_v32, %v883_v45 }
 0x13a   :  { %v1889_v53 = vpop.eup %1888  ;;  %v2497_v55 = vadd.f32 1.0, %v1887_v48 }
 0x13b   :  { %3368 = vst [vmem:[#allocation12_spill] sm:$0xff] %v2494_v49  ;;  %1892 = vpow2.f32 %v1825_v50  ;;  %1794 = vmatmul.msk.bf16.gmra.mxu1 %vm152_vm0, %v2494_v49  ;;  %1813 = vmatmul.msk.bf16.gmra.mxu2 %vm152_vm0, %v2494_v49  ;;  %v888_v56 = vsel %vm887_vm3, %v1885_v32, %v884_v52  ;;  %v896_v58 = vmul.f32 %v1889_v53, %v843_v34  ;;  %v1891_v60 = vpop.eup %1890  ;;  %vm901_vm5 = vweird.f32 %v1889_v53 }
 0x13c   :  { %1894 = vrcp.f32 %v2497_v55  ;;  %v893_v62 = vsel %vm890_vm4, %v892_v57, %v888_v56  ;;  %vm902_vm7 = vmor %vm900_vm6, %vm901_vm5  ;;  %v921_v15 = vand.u32 2147483648, %v2497_v55  ;;  %v919_v38 = vand.u32 2147483647, %v2497_v55 }
 0x13d   :  { %v897_v63 = vsub.f32 1.0, %v896_v58  ;;  %1896 = vtanh.f32 %v494_v54  ;;  %v2504_v4 = vmul.f32 %v1891_v60, %v893_v62  ;;  %vm915_vm10 = vweird.f32 %v2497_v55 }
 0x13e   :  { %v274_v0 = vpop.f32.mrf.mxu0  ;;  %v605_v2 = vpop.f32.mrf.mxu2  ;;  %v922_v52 = vor.u32 1.1754944e-38, %v921_v15  ;;  %vm920_vm12 = vcmp.eq.f32.partialorder %v919_v38, 8.507059e+37 }
 0x13f   :  { %v606_v5 = vadd.f32 %v605_v2, %v2465_v1  ;;  %v898_v6 = vmul.f32 %v1889_v53, %v897_v63  ;;  %v336_v28 = vmax.f32 %v274_v0, 0.0 }
 0x140   :  { %v2507_v8 = vpop.f32.mrf.mxu1 }
 0x141   :  { %v1893_v10 = vpop.eup %1892  ;;  %v1826_v12 = vmul.f32 -1.442695, %v606_v5  ;;  %v899_v13 = vadd.f32 %v1889_v53, %v898_v6 }
 0x142   :  { %v1895_v14 = vpop.eup %1894  ;;  %v2511_v18 = vadd.f32 1.0, %v1893_v10  ;;  %v502_v10 = vadd.f32 %v2492_v46, %v2484_v24 }
 0x143   :  { %1898 = vpow2.f32 %v1826_v12  ;;  %v911_v20 = vmul.f32 %v1895_v14, %v2497_v55  ;;  %v903_v21 = vsel %vm902_vm7, %v1889_v53, %v899_v13  ;;  %v1897_v23 = vpop.eup %1896  ;;  %vm916_vm9 = vweird.f32 %v1895_v14 }
 0x144   :  { %1900 = vrcp.f32 %v2511_v18  ;;  %v908_v26 = vsel %vm905_vm8, %v907_v22, %v903_v21  ;;  %vm917_vm11 = vmor %vm915_vm10, %vm916_vm9  ;;  %v936_v63 = vand.u32 2147483648, %v2511_v18  ;;  %v934_v2 = vand.u32 2147483647, %v2511_v18 }
 0x145   :  { %v912_v25 = vsub.f32 1.0, %v911_v20  ;;  %1902 = vtanh.f32 %v497_v16  ;;  %v2516_v32 = vmul.f32 %v1897_v23, %v908_v26  ;;  %vm930_vm14 = vweird.f32 %v2511_v18 }
 0x146   :  { %v276_v30 = vpop.f32.mrf.mxu0  ;;  %v607_v31 = vpop.f32.mrf.mxu2  ;;  %v937_v16 = vor.u32 1.1754944e-38, %v936_v63  ;;  %vm935_vm1 = vcmp.eq.f32.partialorder %v934_v2, 8.507059e+37 }
 0x147   :  { %v337_v33 = vmax.f32 %v276_v30, 0.0  ;;  %v608_v34 = vadd.f32 %v607_v31, %v2465_v1  ;;  %v913_v36 = vmul.f32 %v1895_v14, %v912_v25 }
 0x148   :  { %v2519_v37 = vpop.f32.mrf.mxu1 }
 0x149   :  { %v1899_v40 = vpop.eup %1898  ;;  %v2524_v41 = vpack.c.bf16 %v337_v33, %v336_v28  ;;  %v1827_v42 = vmul.f32 -1.442695, %v608_v34  ;;  %v914_v44 = vadd.f32 %v1895_v14, %v913_v36 }
 0x14a   :  { %v1901_v45 = vpop.eup %1900  ;;  %v2529_v48 = vadd.f32 1.0, %v1899_v40 }
 0x14b   :  { %3369 = vst [vmem:[#allocation13_spill] sm:$0xff] %v2524_v41  ;;  %1904 = vpow2.f32 %v1827_v42  ;;  %1795 = vmatmul.msk.bf16.gmra.mxu1 %vm152_vm0, %v2524_v41  ;;  %1814 = vmatmul.msk.bf16.gmra.mxu2 %vm152_vm0, %v2524_v41  ;;  %v918_v50 = vsel %vm917_vm11, %v1895_v14, %v914_v44  ;;  %v926_v53 = vmul.f32 %v1901_v45, %v2511_v18  ;;  %v1903_v54 = vpop.eup %1902  ;;  %vm931_vm13 = vweird.f32 %v1901_v45 }
 0x14c   :  { %1906 = vrcp.f32 %v2529_v48  ;;  %v923_v55 = vsel %vm920_vm12, %v922_v52, %v918_v50  ;;  %vm932_vm15 = vmor %vm930_vm14, %vm931_vm13  ;;  %v951_v46 = vand.u32 2147483648, %v2529_v48  ;;  %v949_v33 = vand.u32 2147483647, %v2529_v48 }
 0x14d   :  { %v927_v29 = vsub.f32 1.0, %v926_v53  ;;  %1908 = vtanh.f32 %v499_v47  ;;  %v2537_v58 = vmul.f32 %v1903_v54, %v923_v55  ;;  %vm945_vm3 = vweird.f32 %v2529_v48 }
 0x14e   :  { %v279_v56 = vpop.f32.mrf.mxu0  ;;  %v610_v57 = vpop.f32.mrf.mxu2  ;;  %v952_v52 = vor.u32 1.1754944e-38, %v951_v46  ;;  %vm950_vm5 = vcmp.eq.f32.partialorder %v949_v33, 8.507059e+37 }
 0x14f   :  { %v611_v60 = vadd.f32 %v610_v57, %v2465_v1  ;;  %v928_v62 = vmul.f32 %v1901_v45, %v927_v29  ;;  %v338_v18 = vmax.f32 %v279_v56, 0.0 }
 0x150   :  { %v2541_v0 = vpop.f32.mrf.mxu1 }
 0x151   :  { %v1905_v5 = vpop.eup %1904  ;;  %v1828_v6 = vmul.f32 -1.442695, %v611_v60  ;;  %v929_v7 = vadd.f32 %v1901_v45, %v928_v62 }
 0x152   :  { %v1907_v9 = vpop.eup %1906  ;;  %v2547_v12 = vadd.f32 1.0, %v1905_v5 }
 0x153   :  { %1910 = vpow2.f32 %v1828_v6  ;;  %v941_v13 = vmul.f32 %v1907_v9, %v2529_v48  ;;  %v933_v14 = vsel %vm932_vm15, %v1901_v45, %v929_v7  ;;  %v1909_v20 = vpop.eup %1908  ;;  %vm946_vm2 = vweird.f32 %v1907_v9 }
 0x154   :  { %1912 = vrcp.f32 %v2547_v12  ;;  %v938_v22 = vsel %vm935_vm1, %v937_v16, %v933_v14  ;;  %v504_v45 = vadd.f32 %v2507_v8, %v2484_v24  ;;  %vm947_vm4 = vmor %vm945_vm3, %vm946_vm2  ;;  %v966_v62 = vand.u32 2147483648, %v2547_v12 }
 0x155   :  { %v942_v21 = vsub.f32 1.0, %v941_v13  ;;  %1914 = vtanh.f32 %v502_v10  ;;  %v2552_v26 = vmul.f32 %v1909_v20, %v938_v22  ;;  %v964_v2 = vand.u32 2147483647, %v2547_v12 }
 0x156   :  { %v281_v23 = vpop.f32.mrf.mxu0  ;;  %v612_v25 = vpop.f32.mrf.mxu2  ;;  %vm960_vm7 = vweird.f32 %v2547_v12  ;;  %v507_v10 = vadd.f32 %v2519_v37, %v2484_v24  ;;  %v967_v20 = vor.u32 1.1754944e-38, %v966_v62 }
 0x157   :  { %v339_v28 = vmax.f32 %v281_v23, 0.0  ;;  %v613_v30 = vadd.f32 %v612_v25, %v2465_v1  ;;  %v943_v31 = vmul.f32 %v1907_v9, %v942_v21  ;;  %vm965_vm9 = vcmp.eq.f32.partialorder %v964_v2, 8.507059e+37 }
 0x158   :  { %v2555_v15 = vpop.f32.mrf.mxu1 }
 0x159   :  { %v1911_v36 = vpop.eup %1910  ;;  %v2560_v38 = vpack.c.bf16 %v339_v28, %v338_v18  ;;  %v1829_v40 = vmul.f32 -1.442695, %v613_v30  ;;  %v944_v42 = vadd.f32 %v1907_v9, %v943_v31 }
 0x15a   :  { %v1913_v44 = vpop.eup %1912  ;;  %v2565_v47 = vadd.f32 1.0, %v1911_v36 }
 0x15b   :  { %3370 = vst [vmem:[#allocation14_spill] sm:$0xff] %v2560_v38  ;;  %1916 = vpow2.f32 %v1829_v40  ;;  %1796 = vmatmul.msk.bf16.gmra.mxu1 %vm152_vm0, %v2560_v38  ;;  %1815 = vmatmul.msk.bf16.gmra.mxu2 %vm152_vm0, %v2560_v38  ;;  %v948_v50 = vsel %vm947_vm4, %v1907_v9, %v944_v42  ;;  %v956_v53 = vmul.f32 %v1913_v44, %v2547_v12  ;;  %v1915_v54 = vpop.eup %1914  ;;  %vm961_vm6 = vweird.f32 %v1913_v44 }
 0x15c   :  { %1918 = vrcp.f32 %v2565_v47  ;;  %v953_v48 = vsel %vm950_vm5, %v952_v52, %v948_v50  ;;  %vm962_vm8 = vmor %vm960_vm7, %vm961_vm6  ;;  %v981_v37 = vand.u32 2147483648, %v2565_v47  ;;  %v979_v36 = vand.u32 2147483647, %v2565_v47 }
 0x15d   :  { %v957_v8 = vsub.f32 1.0, %v956_v53  ;;  %1920 = vtanh.f32 %v504_v45  ;;  %v2573_v56 = vmul.f32 %v1915_v54, %v953_v48  ;;  %vm975_vm11 = vweird.f32 %v2565_v47 }
 0x15e   :  { %v284_v55 = vpop.f32.mrf.mxu0  ;;  %v615_v29 = vpop.f32.mrf.mxu2  ;;  %v509_v53 = vadd.f32 %v2541_v0, %v2484_v24  ;;  %vm980_vm13 = vcmp.eq.f32.partialorder %v979_v36, 8.507059e+37 }
 0x15f   :  { %v616_v57 = vadd.f32 %v615_v29, %v2465_v1  ;;  %v958_v60 = vmul.f32 %v1913_v44, %v957_v8  ;;  %v340_v12 = vmax.f32 %v284_v55, 0.0  ;;  %v982_v8 = vor.u32 1.1754944e-38, %v981_v37 }
 0x160   :  { %v2577_v63 = vpop.f32.mrf.mxu1 }
 0x161   :  { %v1917_v5 = vpop.eup %1916  ;;  %v1830_v6 = vmul.f32 -1.442695, %v616_v57  ;;  %v959_v7 = vadd.f32 %v1913_v44, %v958_v60 }
 0x162   :  { %v1919_v9 = vpop.eup %1918  ;;  %v2583_v13 = vadd.f32 1.0, %v1917_v5 }
 0x163   :  { %1922 = vpow2.f32 %v1830_v6  ;;  %v971_v14 = vmul.f32 %v1919_v9, %v2565_v47  ;;  %v963_v16 = vsel %vm962_vm8, %v1913_v44, %v959_v7  ;;  %v1921_v21 = vpop.eup %1920  ;;  %vm976_vm10 = vweird.f32 %v1919_v9 }
 0x164   :  { %1924 = vrcp.f32 %v2583_v13  ;;  %v968_v18 = vsel %vm965_vm9, %v967_v20, %v963_v16  ;;  %vm977_vm12 = vmor %vm975_vm11, %vm976_vm10  ;;  %v996_v5 = vand.u32 2147483648, %v2583_v13  ;;  %v994_v7 = vand.u32 2147483647, %v2583_v13 }
 0x165   :  { %v972_v22 = vsub.f32 1.0, %v971_v14  ;;  %1926 = vtanh.f32 %v507_v10  ;;  %v2588_v46 = vmul.f32 %v1921_v21, %v968_v18  ;;  %vm990_vm15 = vweird.f32 %v2583_v13 }
 0x166   :  { %v286_v23 = vpop.f32.mrf.mxu0  ;;  %v617_v25 = vpop.f32.mrf.mxu2  ;;  %v512_v16 = vadd.f32 %v2555_v15, %v2484_v24  ;;  %v997_v18 = vor.u32 1.1754944e-38, %v996_v5  ;;  %vm995_vm2 = vcmp.eq.f32.partialorder %v994_v7, 8.507059e+37 }
 0x167   :  { %v341_v28 = vmax.f32 %v286_v23, 0.0  ;;  %v618_v30 = vadd.f32 %v617_v25, %v2465_v1  ;;  %v973_v31 = vmul.f32 %v1919_v9, %v972_v22 }
 0x168   :  { %v2591_v33 = vpop.f32.mrf.mxu1 }
 0x169   :  { %v1923_v42 = vpop.eup %1922  ;;  %v2596_v44 = vpack.c.bf16 %v341_v28, %v340_v12  ;;  %v1831_v45 = vmul.f32 -1.442695, %v618_v30  ;;  %v974_v50 = vadd.f32 %v1919_v9, %v973_v31 }
 0x16a   :  { %v1925_v52 = vpop.eup %1924  ;;  %v850_v54 = vadd.f32 1.0, %v1923_v42 }
 0x16b   :  { %3371 = vst [vmem:[#allocation15_spill] sm:$0xff] %v2596_v44  ;;  %1928 = vpow2.f32 %v1831_v45  ;;  %1797 = vmatmul.msk.bf16.gmra.mxu1 %vm152_vm0, %v2596_v44  ;;  %1816 = vmatmul.msk.bf16.gmra.mxu2 %vm152_vm0, %v2596_v44  ;;  %v978_v48 = vsel %vm977_vm12, %v1919_v9, %v974_v50  ;;  %v986_v55 = vmul.f32 %v1925_v52, %v2583_v13  ;;  %v1927_v29 = vpop.eup %1926  ;;  %vm991_vm14 = vweird.f32 %v1925_v52 }
 0x16c   :  { %1930 = vrcp.f32 %v850_v54  ;;  %v983_v47 = vsel %vm980_vm13, %v982_v8, %v978_v48  ;;  %vm992_vm1 = vmor %vm990_vm15, %vm991_vm14  ;;  %v1011_v30 = vand.u32 2147483648, %v850_v54  ;;  %v1009_v45 = vand.u32 2147483647, %v850_v54 }
 0x16d   :  { %v987_v57 = vsub.f32 1.0, %v986_v55  ;;  %v2606_v62 = vmul.f32 %v1927_v29, %v983_v47  ;;  %1932 = vtanh.f32 %v509_v53  ;;  %vm1005_vm4 = vweird.f32 %v850_v54 }
 0x16e   :  { %v289_v60 = vpop.f32.mrf.mxu0  ;;  %v620_v0 = vpop.f32.mrf.mxu2  ;;  %v514_v8 = vadd.f32 %v2577_v63, %v2484_v24  ;;  %v1012_v29 = vor.u32 1.1754944e-38, %v1011_v30  ;;  %vm1010_vm6 = vcmp.eq.f32.partialorder %v1009_v45, 8.507059e+37 }
 0x16f   :  { %v988_v2 = vmul.f32 %v1925_v52, %v987_v57  ;;  %v342_v13 = vmax.f32 %v289_v60, 0.0 }
 0x170   :  { %v2609_v6 = vpop.f32.mrf.mxu1 }
 0x171   :  { %v1929_v9 = vpop.eup %1928  ;;  %v989_v10 = vadd.f32 %v1925_v52, %v988_v2 }
 0x172   :  { %v1931_v14 = vpop.eup %1930  ;;  %v851_v20 = vadd.f32 1.0, %v1929_v9 }
 0x173   :  { %v1001_v21 = vmul.f32 %v1931_v14, %v850_v54  ;;  %v993_v22 = vsel %vm992_vm1, %v1925_v52, %v989_v10  ;;  %v1933_v12 = vpop.eup %1932  ;;  %vm1006_vm3 = vweird.f32 %v1931_v14 }
 0x174   :  { %1934 = vrcp.f32 %v851_v20  ;;  %v998_v25 = vsel %vm995_vm2, %v997_v18, %v993_v22  ;;  %vm1007_vm5 = vmor %vm1005_vm4, %vm1006_vm3  ;;  %v1026_v10 = vand.u32 2147483648, %v851_v20  ;;  %vm1020_vm8 = vweird.f32 %v851_v20 }
 0x175   :  { %v1002_v23 = vsub.f32 1.0, %v1001_v21  ;;  %1936 = vtanh.f32 %v512_v16  ;;  %v2615_v31 = vmul.f32 %v1933_v12, %v998_v25  ;;  %v621_v16 = vadd.f32 %v620_v0, %v2465_v1 }
 0x176   :  { %v291_v37 = vpop.f32.mrf.mxu0  ;;  %v622_v28 = vpop.f32.mrf.mxu2  ;;  %1938 = vtanh.f32 %v514_v8 }
 0x177   :  { %v343_v36 = vmax.f32 %v291_v37, 0.0  ;;  %v1003_v42 = vmul.f32 %v1931_v14, %v1002_v23  ;;  %v623_v63 = vadd.f32 %v622_v28, %v2465_v1  ;;  %v1027_v23 = vor.u32 1.1754944e-38, %v1026_v10 }
 0x178   :  { %v2617_v15 = vpop.f32.mrf.mxu1  ;;  %v1832_v37 = vmul.f32 -1.442695, %v621_v16 }
 0x179   :  { %v2621_v52 = vpack.c.bf16 %v343_v36, %v342_v13  ;;  %v1004_v53 = vadd.f32 %v1931_v14, %v1003_v42  ;;  %v1833_v18 = vmul.f32 -1.442695, %v623_v63 }
 0x17a   :  { %v1935_v48 = vpop.eup %1934 }
 0x17b   :  { %3372 = vst [vmem:[#allocation16_spill] sm:$0xff] %v2621_v52  ;;  %1798 = vmatmul.msk.bf16.gmra.mxu1 %vm152_vm0, %v2621_v52  ;;  %1817 = vmatmul.msk.bf16.gmra.mxu2 %vm152_vm0, %v2621_v52  ;;  %v1008_v55 = vsel %vm1007_vm5, %v1931_v14, %v1004_v53  ;;  %v1016_v47 = vmul.f32 %v1935_v48, %v851_v20  ;;  %v1937_v57 = vpop.eup %1936  ;;  %vm1021_vm7 = vweird.f32 %v1935_v48  ;;  %v1024_v14 = vand.u32 2147483647, %v851_v20 }
 0x17c   :  { %v1013_v60 = vsel %vm1010_vm6, %v1012_v29, %v1008_v55  ;;  %vm1022_vm9 = vmor %vm1020_vm8, %vm1021_vm7  ;;  %v1939_v25 = vpop.eup %1938  ;;  %1940 = vpow2.f32 %v1833_v18 }
 0x17d   :  { %v1017_v2 = vsub.f32 1.0, %v1016_v47  ;;  %v2629_v7 = vmul.f32 %v1937_v57, %v1013_v60  ;;  %vm1025_vm10 = vcmp.eq.f32.partialorder %v1024_v14, 8.507059e+37  ;;  %1942 = vpow2.f32 %v1832_v37 }
 0x17e   :  { %v294_v54 = vpop.f32.mrf.mxu0  ;;  %v625_v5 = vpop.f32.mrf.mxu2 }
 0x17f   :  { %v1018_v9 = vmul.f32 %v1935_v48, %v1017_v2  ;;  %v626_v30 = vadd.f32 %v625_v5, %v2465_v1  ;;  %v344_v0 = vmax.f32 %v294_v54, 0.0 }
 0x180   :  { %v2633_v21 = vpop.f32.mrf.mxu1 }
 0x181   :  { %v1019_v22 = vadd.f32 %v1935_v48, %v1018_v9  ;;  %v1834_v8 = vmul.f32 -1.442695, %v626_v30 }
 0x182   :  { %v1941_v47 = vpop.eup %1940 }
 0x183   :  { %v1023_v12 = vsel %vm1022_vm9, %v1935_v48, %v1019_v22  ;;  %v1943_v57 = vpop.eup %1942  ;;  %v2650_v5 = vadd.f32 1.0, %v1941_v47  ;;  %v519_v47 = vadd.f32 %v2609_v6, %v2484_v24 }
 0x184   :  { %v1028_v28 = vsel %vm1025_vm10, %v1027_v23, %v1023_v12  ;;  %v2654_v9 = vadd.f32 1.0, %v1943_v57  ;;  %v522_v57 = vadd.f32 %v2617_v15, %v2484_v24 }
 0x185   :  { %v2636_v42 = vmul.f32 %v1939_v25, %v1028_v28  ;;  %vm1050_vm7 = vweird.f32 %v2650_v5 }
 0x186   :  { %v296_v13 = vpop.f32.mrf.mxu0  ;;  %v627_v36 = vpop.f32.mrf.mxu2 }
 0x187   :  { %v345_v45 = vmax.f32 %v296_v13, 0.0  ;;  %v628_v53 = vadd.f32 %v627_v36, %v2465_v1 }
 0x188   :  { %v2639_v20 = vpop.f32.mrf.mxu1 }
 0x189   :  { %v2643_v55 = vpack.c.bf16 %v345_v45, %v344_v0  ;;  %v1835_v29 = vmul.f32 -1.442695, %v628_v53 }
 0x18b   :  { %3373 = vst [vmem:[#allocation17_spill] sm:$0xff] %v2643_v55  ;;  %1799 = vmatmul.msk.bf16.gmra.mxu1 %vm152_vm0, %v2643_v55  ;;  %1818 = vmatmul.msk.bf16.gmra.mxu2 %vm152_vm0, %v2643_v55  ;;  %1944 = vpow2.f32 %v1835_v29  ;;  %v517_v29 = vadd.f32 %v2591_v33, %v2484_v24 }
 0x18c   :  { %1946 = vpow2.f32 %v1834_v8 }
 0x18e   :  { %v299_v60 = vpop.f32.mrf.mxu0  ;;  %v630_v2 = vpop.f32.mrf.mxu2 }
 0x18f   :  { %v631_v54 = vadd.f32 %v630_v2, %v2465_v1  ;;  %v346_v18 = vmax.f32 %v299_v60, 0.0 }
 0x190   :  { %v2652_v63 = vpop.f32.mrf.mxu1 }
 0x191   :  { %v1836_v10 = vmul.f32 -1.442695, %v631_v54  ;;  %v1945_v16 = vpop.eup %1944 }
 0x192   :  { %v1947_v14 = vpop.eup %1946  ;;  %v2658_v22 = vadd.f32 1.0, %v1945_v16 }
 0x193   :  { %1948 = vpow2.f32 %v1836_v10  ;;  %v2660_v12 = vadd.f32 1.0, %v1947_v14 }
 0x194   :  { %1950 = vrcp.f32 %v2650_v5  ;;  %vm1080_vm13 = vweird.f32 %v2658_v22 }
 0x195   :  { %1952 = vrcp.f32 %v2654_v9  ;;  %vm1065_vm12 = vweird.f32 %v2660_v12 }
 0x196   :  { %v301_v23 = vpop.f32.mrf.mxu0  ;;  %v632_v25 = vpop.f32.mrf.mxu2  ;;  %1954 = vrcp.f32 %v2658_v22 }
 0x197   :  { %v347_v37 = vmax.f32 %v301_v23, 0.0  ;;  %v633_v30 = vadd.f32 %v632_v25, %v2465_v1  ;;  %1956 = vrcp.f32 %v2660_v12  ;;  %v1041_v23 = vand.u32 2147483648, %v2654_v9 }
 0x198   :  { %v2663_v28 = vpop.f32.mrf.mxu1 }
 0x199   :  { %v1949_v13 = vpop.eup %1948  ;;  %v2666_v36 = vpack.c.bf16 %v347_v37, %v346_v18  ;;  %v1837_v0 = vmul.f32 -1.442695, %v633_v30  ;;  %v524_v30 = vadd.f32 %v2633_v21, %v2484_v24 }
 0x19a   :  { %v2668_v45 = vpop.eup %1950  ;;  %v2671_v53 = vadd.f32 1.0, %v1949_v13 }
 0x19b   :  { %3374 = vst [vmem:[#allocation18_spill] sm:$0xff] %v2666_v36  ;;  %v2673_v8 = vpop.eup %1952  ;;  %1958 = vpow2.f32 %v1837_v0  ;;  %1800 = vmatmul.msk.bf16.gmra.mxu1 %vm152_vm0, %v2666_v36  ;;  %1819 = vmatmul.msk.bf16.gmra.mxu2 %vm152_vm0, %v2666_v36  ;;  %v1046_v60 = vmul.f32 %v2668_v45, %v2650_v5  ;;  %vm1051_vm3 = vweird.f32 %v2668_v45 }
 0x19c   :  { %1960 = vrcp.f32 %v2671_v53  ;;  %v1031_v54 = vmul.f32 %v2673_v8, %v2654_v9  ;;  %v2690_v10 = vpop.eup %1954  ;;  %vm1095_vm15 = vweird.f32 %v2671_v53 }
 0x19d   :  { %1962 = vtanh.f32 %v517_v29  ;;  %v2693_v14 = vpop.eup %1956  ;;  %v1047_v25 = vsub.f32 1.0, %v1046_v60  ;;  %v1076_v0 = vmul.f32 %v2690_v10, %v2658_v22  ;;  %v527_v60 = vadd.f32 %v2639_v20, %v2484_v24 }
 0x19e   :  { %v304_v2 = vpop.f32.mrf.mxu0  ;;  %v635_v33 = vpop.f32.mrf.mxu2  ;;  %1964 = vtanh.f32 %v519_v47  ;;  %v1032_v29 = vsub.f32 1.0, %v1031_v54  ;;  %v1061_v21 = vmul.f32 %v2693_v14, %v2660_v12  ;;  %vm1066_vm11 = vweird.f32 %v2693_v14 }
 0x19f   :  { %v636_v16 = vadd.f32 %v635_v33, %v2465_v1  ;;  %1966 = vtanh.f32 %v522_v57  ;;  %v1071_v33 = vand.u32 2147483648, %v2660_v12  ;;  %v1048_v39 = vmul.f32 %v2668_v45, %v1047_v25 }
 0x1a0   :  { %v2695_v6 = vpop.f32.mrf.mxu1  ;;  %v1077_v50 = vsub.f32 1.0, %v1076_v0  ;;  %v2723_v48 = vmul.f32 %v2673_v8, %v1032_v29  ;;  %v1069_v25 = vand.u32 2147483647, %v2660_v12  ;;  %v1062_v0 = vsub.f32 1.0, %v1061_v21 }
 0x1a1   :  { %v1959_v18 = vpop.eup %1958  ;;  %v1838_v15 = vmul.f32 -1.442695, %v636_v16  ;;  %v2735_v29 = vor.u32 1.1754944e-38, %v1071_v33  ;;  %v1084_v21 = vand.u32 2147483647, %v2658_v22  ;;  %v1086_v33 = vand.u32 2147483648, %v2658_v22 }
 0x1a2   :  { %v2698_v37 = vpop.eup %1960  ;;  %v2702_v13 = vadd.f32 1.0, %v1959_v18  ;;  %v348_v18 = vmax.f32 %v304_v2, 0.0  ;;  %vm1081_vm2 = vweird.f32 %v2690_v10  ;;  %vm2784_vm5 = vcmp.eq.f32.partialorder %v1069_v25, 8.507059e+37 }
 0x1a3   :  { %1968 = vpow2.f32 %v1838_v15  ;;  %v1091_v47 = vmul.f32 %v2698_v37, %v2671_v53  ;;  %v2715_v16 = vpop.eup %1962  ;;  %v2717_v15 = vor.u32 1.1754944e-38, %v1041_v23  ;;  %vm1096_vm14 = vweird.f32 %v2698_v37  ;;  %vm2804_vm10 = vmor %vm1080_vm13, %vm1081_vm2 }
 0x1a4   :  { %1970 = vrcp.f32 %v2702_v13  ;;  %v2720_v34 = vpop.eup %1964  ;;  %vm2769_vm1 = vmor %vm1095_vm15, %vm1096_vm14  ;;  %v1114_v38 = vand.u32 2147483647, %v2702_v13  ;;  %vm2793_vm6 = vcmp.eq.f32.partialorder %v1084_v21, 8.507059e+37  ;;  %vm1110_vm9 = vweird.f32 %v2702_v13 }
 0x1a5   :  { %v1092_v54 = vsub.f32 1.0, %v1091_v47  ;;  %1972 = vtanh.f32 %v524_v30  ;;  %v2726_v36 = vpop.eup %1966  ;;  %v529_v30 = vadd.f32 %v2652_v63, %v2484_v24  ;;  %v1078_v63 = vmul.f32 %v2690_v10, %v1077_v50 }
 0x1a6   :  { %v306_v40 = vpop.f32.mrf.mxu0  ;;  %v637_v20 = vpop.f32.mrf.mxu2  ;;  %1974 = vtanh.f32 %v527_v60  ;;  %v1101_v50 = vand.u32 2147483648, %v2671_v53  ;;  %vm1036_vm14 = vweird.f32 %v2673_v8  ;;  %vm1115_vm13 = vcmp.eq.f32.partialorder %v1114_v38, 8.507059e+37 }
 0x1a7   :  { %v349_v61 = vmax.f32 %v306_v40, 0.0  ;;  %v638_v2 = vadd.f32 %v637_v20, %v2465_v1  ;;  %v1093_v23 = vmul.f32 %v2698_v37, %v1092_v54  ;;  %v2741_v40 = vadd.f32 %v2668_v45, %v1048_v39 }
 0x1a8   :  { %v2733_v47 = vpop.f32.mrf.mxu1  ;;  %v1079_v44 = vadd.f32 %v2690_v10, %v1078_v63  ;;  %v532_v63 = vadd.f32 %v2663_v28, %v2484_v24  ;;  %v1102_v59 = vor.u32 1.1754944e-38, %v1101_v50  ;;  %vm1035_vm2 = vweird.f32 %v2654_v9 }
 0x1a9   :  { %v1969_v17 = vpop.eup %1968  ;;  %v2737_v57 = vpack.c.bf16 %v349_v61, %v348_v18  ;;  %v1839_v49 = vmul.f32 -1.442695, %v638_v2  ;;  %v1094_v61 = vadd.f32 %v2698_v37, %v1093_v23  ;;  %v1099_v18 = vand.u32 2147483647, %v2671_v53 }
 0x1aa   :  { %v2743_v54 = vpop.eup %1970  ;;  %v2745_v60 = vadd.f32 1.0, %v1969_v17  ;;  %v1034_v3 = vadd.f32 %v2673_v8, %v2723_v48 }
 0x1ab   :  { %3375 = vst [vmem:[#allocation19_spill] sm:$0xff] %v2737_v57  ;;  %1976 = vpow2.f32 %v1839_v49  ;;  %1801 = vmatmul.msk.bf16.gmra.mxu1 %vm152_vm0, %v2737_v57  ;;  %1820 = vmatmul.msk.bf16.gmra.mxu2 %vm152_vm0, %v2737_v57  ;;  %v1106_v17 = vmul.f32 %v2743_v54, %v2702_v13  ;;  %v2759_v39 = vpop.eup %1972  ;;  %v1063_v49 = vmul.f32 %v2693_v14, %v1062_v0  ;;  %v1116_v0 = vand.u32 2147483648, %v2702_v13 }
 0x1ac   :  { %1978 = vrcp.f32 %v2745_v60  ;;  %v1975_v2 = vpop.eup %1974  ;;  %vm1111_vm4 = vweird.f32 %v2743_v54  ;;  %vm1100_vm8 = vcmp.eq.f32.partialorder %v1099_v18, 8.507059e+37  ;;  %v1083_v13 = vsel %vm2804_vm10, %v2690_v10, %v1079_v44 }
 0x1ad   :  { %1980 = vtanh.f32 %v529_v30  ;;  %v1107_v20 = vsub.f32 1.0, %v1106_v17  ;;  %v1098_v30 = vsel %vm2769_vm1, %v2698_v37, %v1094_v61  ;;  %vm1112_vm15 = vmor %vm1110_vm9, %vm1111_vm4  ;;  %v1087_v10 = vor.u32 1.1754944e-38, %v1086_v33 }
 0x1ae   :  { %v2767_v23 = vpop.f32.mrf.mxu0  ;;  %v640_v57 = vpop.f32.mrf.mxu2  ;;  %v1103_v50 = vsel %vm1100_vm8, %v1102_v59, %v1098_v30  ;;  %vm2823_vm1 = vmor %vm1065_vm12, %vm1066_vm11  ;;  %vm1125_vm4 = vweird.f32 %v2745_v60 }
 0x1af   :  { %v641_v53 = vadd.f32 %v640_v57, %v2465_v1  ;;  %v1108_v17 = vmul.f32 %v2743_v54, %v1107_v20  ;;  %v1064_v57 = vadd.f32 %v2693_v14, %v1063_v49  ;;  %v1117_v49 = vor.u32 1.1754944e-38, %v1116_v0  ;;  %vm2856_vm12 = vmor %vm1050_vm7, %vm1051_vm3 }
 0x1b0   :  { %v2790_v55 = vpop.f32.mrf.mxu1  ;;  %v1464_v12 = vmul.f32 %v1975_v2, %v1103_v50 }
 0x1b1   :  { %v1977_v41 = vpop.eup %1976  ;;  %v1840_v37 = vmul.f32 -1.442695, %v641_v53  ;;  %v1109_v25 = vadd.f32 %v2743_v54, %v1108_v17  ;;  %v1068_v38 = vsel %vm2823_vm1, %v2693_v14, %v1064_v57  ;;  %v1129_v57 = vand.u32 2147483647, %v2745_v60 }
 0x1b2   :  { %v2809_v21 = vpop.eup %1978  ;;  %v2811_v61 = vadd.f32 1.0, %v1977_v41  ;;  %v1088_v41 = vsel %vm2793_vm6, %v1087_v10, %v1083_v13  ;;  %v1073_v2 = vsel %vm2784_vm5, %v2735_v29, %v1068_v38  ;;  %v534_v29 = vadd.f32 %v2695_v6, %v2484_v24  ;;  %vm2891_vm5 = vmor %vm1035_vm2, %vm1036_vm14 }
 0x1b3   :  { %v1981_v22 = vpop.eup %1980  ;;  %1982 = vpow2.f32 %v1840_v37  ;;  %v1113_v18 = vsel %vm1112_vm15, %v2743_v54, %v1109_v25  ;;  %v1121_v59 = vmul.f32 %v2809_v21, %v2745_v60  ;;  %v350_v54 = vmax.f32 %v2767_v23, 0.0 }
 0x1b4   :  { %1984 = vrcp.f32 %v2811_v61  ;;  %v1118_v44 = vsel %vm1115_vm13, %v1117_v49, %v1113_v18  ;;  %vm1126_vm11 = vweird.f32 %v2809_v21  ;;  %v1131_v37 = vand.u32 2147483648, %v2745_v60 }
 0x1b5   :  { %v1465_v0 = vmul.f32 %v1981_v22, %v1118_v44  ;;  %v1122_v53 = vsub.f32 1.0, %v1121_v59  ;;  %1986 = vtanh.f32 %v532_v63  ;;  %v1056_v63 = vand.u32 2147483648, %v2650_v5  ;;  %vm2873_vm3 = vmor %vm1125_vm4, %vm1126_vm11 }
 0x1b6   :  { %v311_v30 = vpop.f32.mrf.mxu0  ;;  %v642_v17 = vpop.f32.mrf.mxu2  ;;  %v1463_v20 = vmul.f32 %v2759_v39, %v1088_v41  ;;  %v1053_v59 = vsel %vm2856_vm12, %v2668_v45, %v2741_v40  ;;  %v1132_v60 = vor.u32 1.1754944e-38, %v1131_v37  ;;  %v1462_v39 = vmul.f32 %v2726_v36, %v1073_v2 }
 0x1b7   :  { %v351_v25 = vmax.f32 %v311_v30, 0.0  ;;  %v643_v28 = vadd.f32 %v642_v17, %v2465_v1  ;;  %v1495_v14 = vpack.c.bf16 %v1465_v0, %v1464_v12  ;;  %v1123_v33 = vmul.f32 %v2809_v21, %v1122_v53 }
 0x1b8   :  { %v2841_v23 = vpop.f32.mrf.mxu1  ;;  %v1057_v10 = vor.u32 1.1754944e-38, %v1056_v63  ;;  %v1494_v53 = vpack.c.bf16 %v1463_v20, %v1462_v39  ;;  %vm1140_vm9 = vweird.f32 %v2811_v61 }
 0x1b9   :  { %v1983_v50 = vpop.eup %1982  ;;  %v2850_v49 = vpack.c.bf16 %v351_v25, %v350_v54  ;;  %v1841_v13 = vmul.f32 -1.442695, %v643_v28  ;;  %1514 = vmatpush.bf16.xpose.msra.mxu3 %v1495_v14  ;;  %v1124_v52 = vadd.f32 %v2809_v21, %v1123_v33  ;;  %v3392_v54 = vand.u32 2147483647, %v2650_v5 }
 0x1ba   :  { %v1985_v48 = vpop.eup %1984  ;;  %v2864_v18 = vadd.f32 1.0, %v1983_v50  ;;  %v1146_v25 = vand.u32 2147483648, %v2811_v61  ;;  %v1144_v5 = vand.u32 2147483647, %v2811_v61 }
 0x1bb   :  { %1988 = vpow2.f32 %v1841_v13  ;;  %1802 = vmatmul.msk.bf16.gmra.mxu1 %vm152_vm0, %v2850_v49  ;;  %1821 = vmatmul.msk.bf16.gmra.mxu2 %vm152_vm0, %v2850_v49  ;;  %v1128_v6 = vsel %vm2873_vm3, %v2809_v21, %v1124_v52  ;;  %v1136_v45 = vmul.f32 %v1985_v48, %v2811_v61  ;;  %v1987_v40 = vpop.eup %1986  ;;  %vm1130_vm0 = vcmp.eq.f32.partialorder %v1129_v57, 8.507059e+37 }
 0x1bc   :  { %1990 = vrcp.f32 %v2864_v18  ;;  %v1038_v21 = vsel %vm2891_vm5, %v2673_v8, %v1034_v3  ;;  %vm1055_vm6 = vcmp.eq.f32.partialorder %v3392_v54, 8.507059e+37  ;;  %v1133_v12 = vsel %vm1130_vm0, %v1132_v60, %v1128_v6 }
 0x1bd   :  { %v1137_v0 = vsub.f32 1.0, %v1136_v45  ;;  %1992 = vtanh.f32 %v534_v29  ;;  %v1058_v30 = vsel %vm1055_vm6, %v1057_v10, %v1053_v59  ;;  %v2900_v17 = vmul.f32 %v1987_v40, %v1133_v12 }
 0x1be   :  { %v645_v36 = vpop.f32.mrf.mxu2  ;;  %vm1141_vm7 = vweird.f32 %v1985_v48  ;;  %v3393_v8 = vand.u32 2147483647, %v2654_v9  ;;  %v537_v57 = vadd.f32 %v2733_v47, %v2484_v24  ;;  %v1461_v13 = vmul.f32 %v2720_v34, %v1058_v30 }
 0x1bf   :  { %v646_v41 = vadd.f32 %v645_v36, %v2465_v1  ;;  %v1138_v37 = vmul.f32 %v1985_v48, %v1137_v0  ;;  %vm1142_vm10 = vmor %vm1140_vm9, %vm1141_vm7  ;;  %v1147_v52 = vor.u32 1.1754944e-38, %v1146_v25  ;;  %vm1145_vm14 = vcmp.eq.f32.partialorder %v1144_v5, 8.507059e+37 }
 0x1c0   :  { %v2904_v28 = vpop.f32.mrf.mxu1  ;;  %vm1040_vm8 = vcmp.eq.f32.partialorder %v3393_v8, 8.507059e+37  ;;  %v1159_v45 = vand.u32 2147483647, %v2864_v18  ;;  %vm1155_vm13 = vweird.f32 %v2864_v18 }
 0x1c1   :  { %v1989_v14 = vpop.eup %1988  ;;  %v1842_v33 = vmul.f32 -1.442695, %v646_v41  ;;  %1515 = vmatpush.bf16.xpose.msra.mxu3 %v1494_v53  ;;  %v1043_v2 = vsel %vm1040_vm8, %v2717_v15, %v1038_v21  ;;  %v1139_v3 = vadd.f32 %v1985_v48, %v1138_v37  ;;  %v539_v21 = vadd.f32 %v2790_v55, %v2484_v24 }
 0x1c2   :  { %v1991_v63 = vpop.eup %1990  ;;  %v2913_v50 = vadd.f32 1.0, %v1989_v14  ;;  %v1460_v15 = vmul.f32 %v2715_v16, %v1043_v2  ;;  %vm1160_vm2 = vcmp.eq.f32.partialorder %v1159_v45, 8.507059e+37  ;;  %v3394_v2 = vpack.c.bf16 %v2636_v42, %v2629_v7 }
 0x1c3   :  { %1994 = vpow2.f32 %v1842_v33  ;;  %v1151_v9 = vmul.f32 %v1991_v63, %v2864_v18  ;;  %v1143_v22 = vsel %vm1142_vm10, %v1985_v48, %v1139_v3  ;;  %v1993_v29 = vpop.eup %1992  ;;  %vm1156_vm15 = vweird.f32 %v1991_v63 }
 0x1c4   :  { %1996 = vrcp.f32 %v2913_v50  ;;  %v1148_v20 = vsel %vm1145_vm14, %v1147_v52, %v1143_v22  ;;  %v1493_v59 = vpack.c.bf16 %v1461_v13, %v1460_v15  ;;  %v1161_v48 = vand.u32 2147483648, %v2864_v18  ;;  %vm1157_vm1 = vmor %vm1155_vm13, %vm1156_vm15 }
 0x1c5   :  { %v1152_v61 = vsub.f32 1.0, %v1151_v9  ;;  %1998 = vtanh.f32 %v537_v57  ;;  %v2920_v44 = vmul.f32 %v1993_v29, %v1148_v20  ;;  %v1176_v8 = vand.u32 2147483648, %v2913_v50 }
 0x1c6   :  { %v647_v47 = vpop.f32.mrf.mxu2  ;;  %v1162_v0 = vor.u32 1.1754944e-38, %v1161_v48  ;;  %v1174_v5 = vand.u32 2147483647, %v2913_v50  ;;  %vm1170_vm12 = vweird.f32 %v2913_v50  ;;  %v542_v57 = vadd.f32 %v2841_v23, %v2484_v24 }
 0x1c7   :  { %v648_v34 = vadd.f32 %v647_v47, %v2465_v1  ;;  %v1153_v6 = vmul.f32 %v1991_v63, %v1152_v61  ;;  %v1496_v16 = vpack.c.bf16 %v2920_v44, %v2900_v17  ;;  %v1177_v29 = vor.u32 1.1754944e-38, %v1176_v8 }
 0x1c8   :  { %v2924_v60 = vpop.f32.mrf.mxu1  ;;  %vm1175_vm3 = vcmp.eq.f32.partialorder %v1174_v5, 8.507059e+37  ;;  %v3395_v45 = vpack.c.bf16 %v2615_v31, %v2606_v62  ;;  %v3396_v5 = vpack.c.bf16 %v2588_v46, %v2573_v56 }
 0x1c9   :  { %v1995_v40 = vpop.eup %1994  ;;  %v1843_v39 = vmul.f32 -1.442695, %v648_v34  ;;  %1516 = vmatpush.bf16.xpose.msra.mxu3 %v1493_v59  ;;  %v1154_v38 = vadd.f32 %v1991_v63, %v1153_v6 }
 0x1ca   :  { %v1997_v10 = vpop.eup %1996  ;;  %v2932_v54 = vadd.f32 1.0, %v1995_v40 }
 0x1cb   :  { %2000 = vpow2.f32 %v1843_v39  ;;  %v1158_v12 = vsel %vm1157_vm1, %v1991_v63, %v1154_v38  ;;  %v1166_v36 = vmul.f32 %v1997_v10, %v2913_v50  ;;  %v1999_v53 = vpop.eup %1998  ;;  %vm1171_vm11 = vweird.f32 %v1997_v10 }
 0x1cc   :  { %2002 = vrcp.f32 %v2932_v54  ;;  %v1163_v30 = vsel %vm1160_vm2, %v1162_v0, %v1158_v12  ;;  %vm1172_vm4 = vmor %vm1170_vm12, %vm1171_vm11  ;;  %v1191_v47 = vand.u32 2147483648, %v2932_v54  ;;  %v1189_v59 = vand.u32 2147483647, %v2932_v54 }
 0x1cd   :  { %v1167_v41 = vsub.f32 1.0, %v1166_v36  ;;  %2004 = vtanh.f32 %v539_v21  ;;  %v2936_v37 = vmul.f32 %v1999_v53, %v1163_v30  ;;  %vm1185_vm0 = vweird.f32 %v2932_v54 }
 0x1ce   :  { %v650_v18 = vpop.f32.mrf.mxu2  ;;  %v544_v38 = vadd.f32 %v2904_v28, %v2484_v24  ;;  %v1192_v12 = vor.u32 1.1754944e-38, %v1191_v47  ;;  %vm1190_vm7 = vcmp.eq.f32.partialorder %v1189_v59, 8.507059e+37  ;;  %v3397_v59 = vpack.c.bf16 %v2552_v26, %v2537_v58 }
 0x1cf   :  { %v651_v55 = vadd.f32 %v650_v18, %v2465_v1  ;;  %v1168_v25 = vmul.f32 %v1997_v10, %v1167_v41 }
 0x1d0   :  { %v2949_v9 = vpop.f32.mrf.mxu1 }
 0x1d1   :  { %v2001_v14 = vpop.eup %2000  ;;  %v1844_v33 = vmul.f32 -1.442695, %v651_v55  ;;  %1517 = vmatpush.bf16.xpose.msra.mxu3 %v3394_v2  ;;  %v1169_v3 = vadd.f32 %v1997_v10, %v1168_v25  ;;  %v547_v2 = vadd.f32 %v2924_v60, %v2484_v24 }
 0x1d2   :  { %v2003_v63 = vpop.eup %2002  ;;  %v2947_v13 = vadd.f32 1.0, %v2001_v14 }
 0x1d3   :  { %2006 = vpow2.f32 %v1844_v33  ;;  %v1181_v22 = vmul.f32 %v2003_v63, %v2932_v54  ;;  %v1173_v52 = vsel %vm1172_vm4, %v1997_v10, %v1169_v3  ;;  %v2005_v15 = vpop.eup %2004  ;;  %vm1186_vm5 = vweird.f32 %v2003_v63 }
 0x1d4   :  { %2008 = vrcp.f32 %v2947_v13  ;;  %v1178_v42 = vsel %vm1175_vm3, %v1177_v29, %v1173_v52  ;;  %vm1187_vm6 = vmor %vm1185_vm0, %vm1186_vm5  ;;  %v1206_v18 = vand.u32 2147483648, %v2947_v13  ;;  %v1204_v55 = vand.u32 2147483647, %v2947_v13 }
 0x1d5   :  { %v1182_v7 = vsub.f32 1.0, %v1181_v22  ;;  %2010 = vtanh.f32 %v542_v57  ;;  %v2953_v61 = vmul.f32 %v2005_v15, %v1178_v42  ;;  %vm1200_vm9 = vweird.f32 %v2947_v13 }
 0x1d6   :  { %v652_v50 = vpop.f32.mrf.mxu2  ;;  %v1207_v22 = vor.u32 1.1754944e-38, %v1206_v18  ;;  %vm1205_vm14 = vcmp.eq.f32.partialorder %v1204_v55, 8.507059e+37 }
 0x1d7   :  { %v653_v23 = vadd.f32 %v652_v50, %v2465_v1  ;;  %v1183_v20 = vmul.f32 %v2003_v63, %v1182_v7  ;;  %v1497_v34 = vpack.c.bf16 %v2953_v61, %v2936_v37 }
 0x1d8   :  { %v2970_v62 = vpop.f32.mrf.mxu1 }
 0x1d9   :  { %v2007_v6 = vpop.eup %2006  ;;  %v1845_v48 = vmul.f32 -1.442695, %v653_v23  ;;  %1518 = vmatpush.bf16.xpose.msra.mxu3 %v3395_v45  ;;  %v1184_v40 = vadd.f32 %v2003_v63, %v1183_v20  ;;  %v549_v45 = vadd.f32 %v2949_v9, %v2484_v24 }
 0x1da   :  { %v2009_v39 = vpop.eup %2008  ;;  %v2966_v10 = vadd.f32 1.0, %v2007_v6 }
 0x1db   :  { %2012 = vpow2.f32 %v1845_v48  ;;  %v1188_v21 = vsel %vm1187_vm6, %v2003_v63, %v1184_v40  ;;  %v1196_v0 = vmul.f32 %v2009_v39, %v2947_v13  ;;  %v2011_v36 = vpop.eup %2010  ;;  %vm1201_vm8 = vweird.f32 %v2009_v39 }
 0x1dc   :  { %2014 = vrcp.f32 %v2966_v10  ;;  %v1193_v31 = vsel %vm1190_vm7, %v1192_v12, %v1188_v21  ;;  %vm1202_vm10 = vmor %vm1200_vm9, %vm1201_vm8  ;;  %v1221_v42 = vand.u32 2147483648, %v2966_v10  ;;  %v1219_v50 = vand.u32 2147483647, %v2966_v10 }
 0x1dd   :  { %v1197_v54 = vsub.f32 1.0, %v1196_v0  ;;  %2016 = vtanh.f32 %v544_v38  ;;  %v2972_v30 = vmul.f32 %v2011_v36, %v1193_v31  ;;  %vm1215_vm13 = vweird.f32 %v2966_v10 }
 0x1de   :  { %v655_v53 = vpop.f32.mrf.mxu2  ;;  %v1222_v38 = vor.u32 1.1754944e-38, %v1221_v42  ;;  %vm1220_vm2 = vcmp.eq.f32.partialorder %v1219_v50, 8.507059e+37 }
 0x1df   :  { %v656_v28 = vadd.f32 %v655_v53, %v2465_v1  ;;  %v1198_v41 = vmul.f32 %v2009_v39, %v1197_v54 }
 0x1e0   :  { %v2984_v46 = vpop.f32.mrf.mxu1 }
 0x1e1   :  { %v2013_v25 = vpop.eup %2012  ;;  %v1846_v8 = vmul.f32 -1.442695, %v656_v28  ;;  %1519 = vmatpush.bf16.xpose.msra.mxu3 %v3396_v5  ;;  %v1199_v14 = vadd.f32 %v2009_v39, %v1198_v41  ;;  %v3398_v28 = vpack.c.bf16 %v2516_v32, %v2504_v4 }
 0x1e2   :  { %v2015_v33 = vpop.eup %2014  ;;  %v865_v3 = vadd.f32 1.0, %v2013_v25  ;;  %v552_v25 = vadd.f32 %v2970_v62, %v2484_v24 }
 0x1e3   :  { %2018 = vpow2.f32 %v1846_v8  ;;  %v1211_v63 = vmul.f32 %v2015_v33, %v2966_v10  ;;  %v1203_v57 = vsel %vm1202_vm10, %v2009_v39, %v1199_v14  ;;  %v2017_v52 = vpop.eup %2016  ;;  %vm1216_vm15 = vweird.f32 %v2015_v33 }
 0x1e4   :  { %2020 = vrcp.f32 %v865_v3  ;;  %v1208_v56 = vsel %vm1205_vm14, %v1207_v22, %v1203_v57  ;;  %vm1217_vm1 = vmor %vm1215_vm13, %vm1216_vm15  ;;  %v1236_v31 = vand.u32 2147483648, %v865_v3  ;;  %v1234_v54 = vand.u32 2147483647, %v865_v3 }
 0x1e5   :  { %v1212_v29 = vsub.f32 1.0, %v1211_v63  ;;  %2022 = vtanh.f32 %v547_v2  ;;  %v2986_v15 = vmul.f32 %v2017_v52, %v1208_v56  ;;  %vm1230_vm12 = vweird.f32 %v865_v3 }
 0x1e6   :  { %v657_v13 = vpop.f32.mrf.mxu2  ;;  %v1237_v14 = vor.u32 1.1754944e-38, %v1236_v31  ;;  %vm1235_vm3 = vcmp.eq.f32.partialorder %v1234_v54, 8.507059e+37 }
 0x1e7   :  { %v658_v60 = vadd.f32 %v657_v13, %v2465_v1  ;;  %v1213_v7 = vmul.f32 %v2015_v33, %v1212_v29  ;;  %v1498_v23 = vpack.c.bf16 %v2986_v15, %v2972_v30  ;;  %v554_v13 = vadd.f32 %v2984_v46, %v2484_v24 }
 0x1e8   :  { %v3003_v9 = vpop.f32.mrf.mxu1 }
 0x1e9   :  { %v2019_v20 = vpop.eup %2018  ;;  %v1847_v47 = vmul.f32 -1.442695, %v658_v60  ;;  %1520 = vmatpush.bf16.xpose.msra.mxu3 %v3397_v59  ;;  %v1214_v6 = vadd.f32 %v2015_v33, %v1213_v7 }
 0x1ea   :  { %v2021_v48 = vpop.eup %2020  ;;  %v866_v40 = vadd.f32 1.0, %v2019_v20 }
 0x1eb   :  { %2024 = vpow2.f32 %v1847_v47  ;;  %v1218_v39 = vsel %vm1217_vm1, %v2015_v33, %v1214_v6  ;;  %v1226_v21 = vmul.f32 %v2021_v48, %v865_v3  ;;  %v2023_v12 = vpop.eup %2022  ;;  %vm1231_vm11 = vweird.f32 %v2021_v48 }
 0x1ec   :  { %2026 = vrcp.f32 %v866_v40  ;;  %v1223_v0 = vsel %vm1220_vm2, %v1222_v38, %v1218_v39  ;;  %vm1232_vm4 = vmor %vm1230_vm12, %vm1231_vm11  ;;  %v1251_v32 = vand.u32 2147483648, %v866_v40  ;;  %v1249_v3 = vand.u32 2147483647, %v866_v40 }
 0x1ed   :  { %v1227_v36 = vsub.f32 1.0, %v1226_v21  ;;  %v3001_v26 = vmul.f32 %v2023_v12, %v1223_v0  ;;  %2028 = vtanh.f32 %v549_v45  ;;  %vm1245_vm0 = vweird.f32 %v866_v40 }
 0x1ee   :  { %v2999_v58 = vpop.f32.mrf.mxu2  ;;  %v1252_v7 = vor.u32 1.1754944e-38, %v1251_v32  ;;  %vm1250_vm7 = vcmp.eq.f32.partialorder %v1249_v3, 8.507059e+37 }
 0x1ef   :  { %v1228_v10 = vmul.f32 %v2021_v48, %v1227_v36 }
 0x1f0   :  { %v3014_v56 = vpop.f32.mrf.mxu1 }
 0x1f1   :  { %v2025_v53 = vpop.eup %2024  ;;  %1521 = vmatpush.bf16.xpose.msra.mxu3 %v3398_v28  ;;  %v1229_v41 = vadd.f32 %v2021_v48, %v1228_v10 }
 0x1f2   :  { %v2027_v18 = vpop.eup %2026  ;;  %v867_v55 = vadd.f32 1.0, %v2025_v53 }
 0x1f3   :  { %v1241_v8 = vmul.f32 %v2027_v18, %v866_v40  ;;  %v1233_v5 = vsel %vm1232_vm4, %v2021_v48, %v1229_v41  ;;  %v2029_v33 = vpop.eup %2028  ;;  %vm1246_vm5 = vweird.f32 %v2027_v18  ;;  %v661_v41 = vadd.f32 %v2999_v58, %v2465_v1 }
 0x1f4   :  { %2030 = vrcp.f32 %v867_v55  ;;  %v1238_v63 = vsel %vm1235_vm3, %v1237_v14, %v1233_v5  ;;  %vm1247_vm6 = vmor %vm1245_vm0, %vm1246_vm5  ;;  %v1266_v45 = vand.u32 2147483648, %v867_v55  ;;  %v1264_v40 = vand.u32 2147483647, %v867_v55 }
 0x1f5   :  { %v1242_v2 = vsub.f32 1.0, %v1241_v8  ;;  %v3010_v22 = vmul.f32 %v2029_v33, %v1238_v63  ;;  %2032 = vtanh.f32 %v552_v25  ;;  %vm1260_vm9 = vweird.f32 %v867_v55 }
 0x1f6   :  { %v662_v57 = vpop.f32.mrf.mxu2  ;;  %2034 = vtanh.f32 %v554_v13  ;;  %v1267_v46 = vor.u32 1.1754944e-38, %v1266_v45  ;;  %vm1265_vm14 = vcmp.eq.f32.partialorder %v1264_v40, 8.507059e+37  ;;  %v1848_v14 = vmul.f32 -1.442695, %v661_v41 }
 0x1f7   :  { %v1243_v4 = vmul.f32 %v2027_v18, %v1242_v2  ;;  %v1499_v52 = vpack.c.bf16 %v3010_v22, %v3001_v26 }
 0x1f8   :  { %v3020_v21 = vpop.f32.mrf.mxu1 }
 0x1f9   :  { %v1244_v62 = vadd.f32 %v2027_v18, %v1243_v4 }
 0x1fa   :  { %v2031_v29 = vpop.eup %2030 }
 0x1fb   :  { %v1248_v60 = vsel %vm1247_vm6, %v2027_v18, %v1244_v62  ;;  %v1256_v42 = vmul.f32 %v2031_v29, %v867_v55  ;;  %v2033_v50 = vpop.eup %2032  ;;  %vm1261_vm8 = vweird.f32 %v2031_v29  ;;  %v663_v55 = vadd.f32 %v662_v57, %v2465_v1 }
 0x1fc   :  { %v1253_v20 = vsel %vm1250_vm7, %v1252_v7, %v1248_v60  ;;  %vm1262_vm10 = vmor %vm1260_vm9, %vm1261_vm8  ;;  %v2035_v12 = vpop.eup %2034 }
 0x1fd   :  { %v1257_v47 = vsub.f32 1.0, %v1256_v42  ;;  %v3018_v6 = vmul.f32 %v2033_v50, %v1253_v20  ;;  %v1849_v2 = vmul.f32 -1.442695, %v663_v55 }
 0x1fe   :  { %v665_v59 = vpop.f32.mrf.mxu2 }
 0x1ff   :  { %v1258_v48 = vmul.f32 %v2031_v29, %v1257_v47  ;;  %v666_v54 = vadd.f32 %v665_v59, %v2465_v1 }
 0x200   :  { %v563_v25 = vpop.f32.mrf.mxu1 }
 0x201   :  { %v1259_v39 = vadd.f32 %v2031_v29, %v1258_v48  ;;  %v1850_v18 = vmul.f32 -1.442695, %v666_v54 }
 0x203   :  { %v1263_v38 = vsel %vm1262_vm10, %v2031_v29, %v1259_v39 }
 0x204   :  { %v1268_v0 = vsel %vm1265_vm14, %v1267_v46, %v1263_v38 }
 0x205   :  { %v3022_v10 = vmul.f32 %v2035_v12, %v1268_v0 }
 0x206   :  { %v667_v36 = vpop.f32.mrf.mxu2 }
 0x207   :  { %v668_v31 = vadd.f32 %v667_v36, %v2465_v1  ;;  %v1500_v53 = vpack.c.bf16 %v3022_v10, %v3018_v6  ;;  %v1508_v6 = vld [vmem:[%s3347_s5] sm:$0x3]  ;;  %v2168_v10 = vmov 0  }
 0x208   :  { %v566_v62 = vpop.f32.mrf.mxu1  ;;  %1878 = vset.pattern.permute.xlu0 %v2168_v10  ;;  %1879 = vset.pattern.permute.xlu1 %v2168_v10 }
 0x209   :  { %v1851_v28 = vmul.f32 -1.442695, %v668_v31  ;;  %1511 = vperm.xlu0 %1878, %v1508_v6  }
 0x20b   :  { %2036 = vpow2.f32 %v1851_v28  ;;  %v564_v28 = vadd.f32 %v563_v25, %v2484_v24  ;;  %v562_v25 = vadd.f32 %v3020_v21, %v2484_v24 }
 0x20c   :  { %2038 = vpow2.f32 %v1850_v18  ;;  %v567_v18 = vadd.f32 %v566_v62, %v2484_v24 }
 0x20e   :  { %v670_v8 = vpop.f32.mrf.mxu2 }
 0x20f   :  { %v671_v5 = vadd.f32 %v670_v8, %v2465_v1 }
 0x210   :  { %v568_v40 = vpop.f32.mrf.mxu1 }
 0x211   :  { %v1852_v33 = vmul.f32 -1.442695, %v671_v5  ;;  %v2037_v63 = vpop.eup %2036 }
 0x212   :  { %v2039_v4 = vpop.eup %2038  ;;  %v3032_v32 = vadd.f32 1.0, %v2037_v63 }
 0x213   :  { %2040 = vpow2.f32 %v1852_v33  ;;  %v3035_v29 = vadd.f32 1.0, %v2039_v4 }
 0x214   :  { %2042 = vpow2.f32 %v1848_v14  ;;  %v569_v14 = vadd.f32 %v568_v40, %v2484_v24  ;;  %vm1320_vm0 = vweird.f32 %v3032_v32 }
 0x215   :  { %2044 = vpow2.f32 %v1849_v2  ;;  %vm1305_vm7 = vweird.f32 %v3035_v29 }
 0x216   :  { %v672_v58 = vpop.f32.mrf.mxu2  ;;  %2046 = vrcp.f32 %v3032_v32 }
 0x217   :  { %v673_v3 = vadd.f32 %v672_v58, %v2465_v1 }
 0x218   :  { %v3068_v58 = vpop.f32.mrf.mxu1 }
 0x219   :  { %v2041_v57 = vpop.eup %2040  ;;  %v1853_v13 = vmul.f32 -1.442695, %v673_v3 }
 0x21a   :  { %v2043_v60 = vpop.eup %2042  ;;  %v872_v7 = vadd.f32 1.0, %v2041_v57 }
 0x21b   :  { %2048 = vpow2.f32 %v1853_v13  ;;  %v2045_v42 = vpop.eup %2044  ;;  %v3038_v50 = vadd.f32 1.0, %v2043_v60 }
 0x21c   :  { %2050 = vrcp.f32 %v872_v7  ;;  %v3043_v47 = vadd.f32 1.0, %v2045_v42  ;;  %v3045_v59 = vpop.eup %2046  ;;  %v1341_v3 = vand.u32 2147483648, %v872_v7  ;;  %vm1335_vm13 = vweird.f32 %v872_v7 }
 0x21d   :  { %2052 = vrcp.f32 %v3035_v29  ;;  %v1316_v0 = vmul.f32 %v3045_v59, %v3032_v32  ;;  %v1339_v57 = vand.u32 2147483647, %v872_v7  ;;  %vm1321_vm12 = vweird.f32 %v3045_v59 }
 0x21e   :  { %v3041_v20 = vpop.f32.mrf.mxu2  ;;  %2054 = vrcp.f32 %v3038_v50  ;;  %vm3094_vm8 = vmor %vm1320_vm0, %vm1321_vm12 }
 0x21f   :  { %2056 = vrcp.f32 %v3043_v47  ;;  %v1317_v8 = vsub.f32 1.0, %v1316_v0  ;;  %vm1340_vm4 = vcmp.eq.f32.partialorder %v1339_v57, 8.507059e+37 }
 0x221   :  { %v2049_v48 = vpop.eup %2048  ;;  %v1318_v60 = vmul.f32 %v3045_v59, %v1317_v8 }
 0x222   :  { %v2051_v45 = vpop.eup %2050  ;;  %v873_v39 = vadd.f32 1.0, %v2049_v48 }
 0x223   :  { %v3048_v38 = vpop.eup %2052  ;;  %v1331_v46 = vmul.f32 %v2051_v45, %v872_v7  ;;  %vm1336_vm15 = vweird.f32 %v2051_v45  ;;  %v1319_v8 = vadd.f32 %v3045_v59, %v1318_v60 }
 0x224   :  { %2058 = vrcp.f32 %v873_v39  ;;  %v1301_v31 = vmul.f32 %v3048_v38, %v3035_v29  ;;  %v3057_v54 = vpop.eup %2054  ;;  %vm3075_vm1 = vmor %vm1335_vm13, %vm1336_vm15  ;;  %v1356_v21 = vand.u32 2147483648, %v873_v39  ;;  %v1354_v7 = vand.u32 2147483647, %v873_v39 }
 0x225   :  { %v1332_v12 = vsub.f32 1.0, %v1331_v46  ;;  %v3061_v55 = vpop.eup %2056  ;;  %v1271_v2 = vmul.f32 %v3057_v54, %v3038_v50  ;;  %2060 = vtanh.f32 %v564_v28  ;;  %vm1306_vm11 = vweird.f32 %v3048_v38 }
 0x226   :  { %v3053_v36 = vpop.f32.mrf.mxu2  ;;  %v1302_v33 = vsub.f32 1.0, %v1301_v31  ;;  %2062 = vtanh.f32 %v567_v18  ;;  %v1286_v62 = vmul.f32 %v3061_v55, %v3043_v47  ;;  %v1342_v31 = vor.u32 1.1754944e-38, %v1341_v3  ;;  %vm1307_vm9 = vmor %vm1305_vm7, %vm1306_vm11 }
 0x227   :  { %v1333_v41 = vmul.f32 %v2051_v45, %v1332_v12  ;;  %2064 = vtanh.f32 %v569_v14  ;;  %v1272_v46 = vsub.f32 1.0, %v1271_v2  ;;  %vm1350_vm3 = vweird.f32 %v873_v39 }
 0x228   :  { %v1303_v40 = vmul.f32 %v3048_v38, %v1302_v33  ;;  %v1287_v28 = vsub.f32 1.0, %v1286_v62  ;;  %v1357_v2 = vor.u32 1.1754944e-38, %v1356_v21  ;;  %vm1355_vm6 = vcmp.eq.f32.partialorder %v1354_v7, 8.507059e+37 }
 0x229   :  { %v1334_v63 = vadd.f32 %v2051_v45, %v1333_v41  ;;  %v1324_v3 = vand.u32 2147483647, %v3032_v32  ;;  %2066 = vtanh.f32 %v562_v25  ;;  %vm1291_vm15 = vweird.f32 %v3061_v55 }
 0x22a   :  { %v2059_v5 = vpop.eup %2058  ;;  %v1288_v21 = vmul.f32 %v3061_v55, %v1287_v28  ;;  %v557_v28 = vadd.f32 %v3003_v9, %v2484_v24  ;;  %vm1276_vm13 = vweird.f32 %v3057_v54  ;;  %vm1275_vm11 = vweird.f32 %v3038_v50 }
 0x22b   :  { %v1346_v4 = vmul.f32 %v2059_v5, %v873_v39  ;;  %v1338_v12 = vsel %vm3075_vm1, %v2051_v45, %v1334_v63  ;;  %vm1351_vm2 = vweird.f32 %v2059_v5  ;;  %v2061_v41 = vpop.eup %2060  ;;  %v1326_v45 = vand.u32 2147483648, %v3032_v32  ;;  %vm3131_vm12 = vmor %vm1275_vm11, %vm1276_vm13 }
 0x22c   :  { %v2063_v14 = vpop.eup %2062  ;;  %v1343_v33 = vsel %vm1340_vm4, %v1342_v31, %v1338_v12  ;;  %vm1352_vm5 = vmor %vm1350_vm3, %vm1351_vm2  ;;  %v1309_v39 = vand.u32 2147483647, %v3035_v29  ;;  %v1323_v32 = vsel %vm3094_vm8, %v3045_v59, %v1319_v8  ;;  %vm1325_vm10 = vcmp.eq.f32.partialorder %v1324_v3, 8.507059e+37 }
 0x22d   :  { %v1347_v13 = vsub.f32 1.0, %v1346_v4  ;;  %v1304_v4 = vadd.f32 %v3048_v38, %v1303_v40  ;;  %v2065_v62 = vpop.eup %2064  ;;  %v3102_v40 = vpop.f32.mrf.mxu1  ;;  %v1273_v31 = vmul.f32 %v3057_v54, %v1272_v46  ;;  %v1289_v25 = vadd.f32 %v3061_v55, %v1288_v21 }
 0x22e   :  { %v3073_v42 = vpop.f32.mrf.mxu2  ;;  %vm1310_vm14 = vcmp.eq.f32.partialorder %v1309_v39, 8.507059e+37  ;;  %vm1290_vm1 = vweird.f32 %v3043_v47 }
 0x22f   :  { %v1348_v0 = vmul.f32 %v2059_v5, %v1347_v13  ;;  %v1311_v13 = vand.u32 2147483648, %v3035_v29  ;;  %v1327_v29 = vor.u32 1.1754944e-38, %v1326_v45  ;;  %v1308_v7 = vsel %vm1307_vm9, %v3048_v38, %v1304_v4  ;;  %vm3120_vm2 = vmor %vm1290_vm1, %vm1291_vm15 }
 0x230   :  { %v1296_v38 = vand.u32 2147483648, %v3043_v47  ;;  %v1281_v45 = vand.u32 2147483648, %v3038_v50  ;;  %v1279_v4 = vand.u32 2147483647, %v3038_v50 }
 0x231   :  { %v1349_v18 = vadd.f32 %v2059_v5, %v1348_v0  ;;  %v1312_v59 = vor.u32 1.1754944e-38, %v1311_v13  ;;  %v1328_v8 = vsel %vm1325_vm10, %v1327_v29, %v1323_v32  ;;  %v681_v32 = vadd.f32 %v3073_v42, %v2465_v1 }
 0x232   :  { %v1479_v46 = vmul.f32 %v2061_v41, %v1328_v8  ;;  %v1293_v41 = vsel %vm3120_vm2, %v3061_v55, %v1289_v25  ;;  %v3142_v55 = vld [vmem:[%s3346_s4] sm:$0x1]  ;;  %vm1280_vm3 = vcmp.eq.f32.partialorder %v1279_v4, 8.507059e+37 }
 0x233   :  { %v1353_v63 = vsel %vm1352_vm5, %v2059_v5, %v1349_v18  ;;  %v1480_v5 = vmul.f32 %v2063_v14, %v1343_v33  ;;  %v559_v18 = vadd.f32 %v3014_v56, %v2484_v24  ;;  %v1313_v14 = vsel %vm1310_vm14, %v1312_v59, %v1308_v7  ;;  %1522 = vmatmul.bf16.vlgmr.msra.gmra.mxu3 %v3142_v55 }
 0x234   :  { %v1358_v57 = vsel %vm1355_vm6, %v1357_v2, %v1353_v63  ;;  %v1274_v33 = vadd.f32 %v3057_v54, %v1273_v31  ;;  %v1294_v56 = vand.u32 2147483647, %v3043_v47  ;;  %v2067_v2 = vpop.eup %2066 }
 0x235   :  { %v1481_v48 = vmul.f32 %v2065_v62, %v1358_v57  ;;  %2068 = vtanh.f32 %v559_v18  ;;  %v1478_v9 = vmul.f32 %v2067_v2, %v1313_v14  ;;  %v1297_v62 = vor.u32 1.1754944e-38, %v1296_v38  ;;  %v3144_v13 = vpop.f32.mrf.mxu1 }
 0x236   :  { %v682_v12 = vpop.f32.mrf.mxu2  ;;  %2070 = vtanh.f32 %v557_v28  ;;  %v1278_v50 = vsel %vm3131_vm12, %v3057_v54, %v1274_v33  ;;  %vm1295_vm4 = vcmp.eq.f32.partialorder %v1294_v56, 8.507059e+37  ;;  %v1856_v18 = vmul.f32 -1.442695, %v681_v32 }
 0x237   :  { %v1503_v0 = vpack.c.bf16 %v1481_v48, %v1480_v5  ;;  %v1502_v39 = vpack.c.bf16 %v1479_v46, %v1478_v9  ;;  %v683_v60 = vadd.f32 %v682_v12, %v2465_v1  ;;  %v1282_v5 = vor.u32 1.1754944e-38, %v1281_v45 }
 0x238   :  { %v1298_v48 = vsel %vm1295_vm4, %v1297_v62, %v1293_v41  ;;  %v678_v12 = vadd.f32 %v3053_v36, %v2465_v1  ;;  %v676_v14 = vadd.f32 %v3041_v20, %v2465_v1 }
 0x239   :  { %1527 = vmatpush.bf16.xpose.msrb.mxu3 %v1503_v0  ;;  %v1283_v29 = vsel %vm1280_vm3, %v1282_v5, %v1278_v50  ;;  %v1857_v31 = vmul.f32 -1.442695, %v683_v60 }
 0x23a   :  { %v1855_v46 = vmul.f32 -1.442695, %v678_v12  ;;  %v1854_v2 = vmul.f32 -1.442695, %v676_v14 }
 0x23b   :  { %v2069_v54 = vpop.eup %2068 }
 0x23c   :  { %v1477_v0 = vmul.f32 %v2069_v54, %v1298_v48  ;;  %v2071_v7 = vpop.eup %2070 }
 0x23d   :  { %v1476_v59 = vmul.f32 %v2071_v7, %v1283_v29  ;;  %v3155_v33 = vpop.f32.mrf.mxu1 }
 0x23e   :  { %v685_v3 = vpop.f32.mrf.mxu2 }
 0x23f   :  { %v686_v57 = vadd.f32 %v685_v3, %v2465_v1  ;;  %v1501_v28 = vpack.c.bf16 %v1477_v0, %v1476_v59 }
 0x241   :  { %v1858_v21 = vmul.f32 -1.442695, %v686_v57  ;;  %1528 = vmatpush.bf16.xpose.msrb.mxu3 %v1502_v39 }
 0x243   :  { %2072 = vpow2.f32 %v1858_v21 }
 0x244   :  { %2074 = vpow2.f32 %v1857_v31 }
 0x245   :  { %2076 = vpow2.f32 %v1856_v18  ;;  %v581_v41 = vpop.f32.mrf.mxu1 }
 0x246   :  { %v687_v8 = vpop.f32.mrf.mxu2  ;;  %v582_v59 = vadd.f32 %v581_v41, %v2484_v24 }
 0x247   :  { %v688_v25 = vadd.f32 %v687_v8, %v2465_v1 }
 0x249   :  { %v2073_v42 = vpop.eup %2072  ;;  %v1859_v38 = vmul.f32 -1.442695, %v688_v25  ;;  %1529 = vmatpush.bf16.xpose.msrb.mxu3 %v1501_v28 }
 0x24a   :  { %v3157_v56 = vadd.f32 1.0, %v2073_v42  ;;  %v2075_v36 = vpop.eup %2074 }
 0x24b   :  { %2078 = vpow2.f32 %v1859_v38  ;;  %v2077_v45 = vpop.eup %2076  ;;  %v3160_v9 = vadd.f32 1.0, %v2075_v36 }
 0x24c   :  { %2080 = vpow2.f32 %v1855_v46  ;;  %v3165_v1 = vadd.f32 1.0, %v2077_v45  ;;  %v1431_v15 = vand.u32 2147483648, %v3157_v56  ;;  %vm1425_vm8 = vweird.f32 %v3157_v56 }
 0x24d   :  { %2082 = vrcp.f32 %v3157_v56  ;;  %v583_v22 = vpop.f32.mrf.mxu1  ;;  %v1429_v42 = vand.u32 2147483647, %v3157_v56  ;;  %vm1410_vm1 = vweird.f32 %v3160_v9  ;;  %v1414_v37 = vand.u32 2147483647, %v3160_v9 }
 0x24e   :  { %2084 = vpow2.f32 %v1854_v2  ;;  %v584_v29 = vadd.f32 %v583_v22, %v2484_v24  ;;  %vm1395_vm2 = vweird.f32 %v3165_v1 }
 0x24f   :  { %vm1430_vm14 = vcmp.eq.f32.partialorder %v1429_v42, 8.507059e+37  ;;  %vm1415_vm4 = vcmp.eq.f32.partialorder %v1414_v37, 8.507059e+37 }
 0x251   :  { %v2079_v63 = vpop.eup %2078  ;;  %1530 = vmatpush.bf16.xpose.msrb.mxu3 %v1500_v53 }
 0x252   :  { %v879_v20 = vadd.f32 1.0, %v2079_v63  ;;  %v2081_v4 = vpop.eup %2080  ;;  %v577_v63 = vadd.f32 %v3144_v13, %v2484_v24  ;;  %v1416_v13 = vand.u32 2147483648, %v3160_v9 }
 0x253   :  { %v3167_v3 = vpop.eup %2082  ;;  %v3171_v62 = vadd.f32 1.0, %v2081_v4  ;;  %v1432_v4 = vor.u32 1.1754944e-38, %v1431_v15 }
 0x254   :  { %2086 = vrcp.f32 %v879_v20  ;;  %v2085_v47 = vpop.eup %2084  ;;  %v1421_v57 = vmul.f32 %v3167_v3, %v3157_v56  ;;  %v1446_v12 = vand.u32 2147483648, %v879_v20  ;;  %vm1440_vm0 = vweird.f32 %v879_v20 }
 0x255   :  { %2088 = vrcp.f32 %v3160_v9  ;;  %v3181_v39 = vadd.f32 1.0, %v2085_v47  ;;  %vm1426_vm6 = vweird.f32 %v3167_v3  ;;  %v1444_v28 = vand.u32 2147483647, %v879_v20 }
 0x256   :  { %2090 = vrcp.f32 %v3165_v1  ;;  %v1422_v48 = vsub.f32 1.0, %v1421_v57  ;;  %vm3219_vm9 = vmor %vm1425_vm8, %vm1426_vm6  ;;  %v1447_v36 = vor.u32 1.1754944e-38, %v1446_v12  ;;  %vm1380_vm6 = vweird.f32 %v3171_v62 }
 0x257   :  { %2092 = vrcp.f32 %v3171_v62  ;;  %vm1445_vm10 = vcmp.eq.f32.partialorder %v1444_v28, 8.507059e+37  ;;  %v1384_v44 = vand.u32 2147483647, %v3171_v62  ;;  %vm1365_vm8 = vweird.f32 %v3181_v39 }
 0x258   :  { %2094 = vrcp.f32 %v3181_v39  ;;  %v1423_v54 = vmul.f32 %v3167_v3, %v1422_v48 }
 0x259   :  { %1531 = vmatpush.bf16.xpose.msrb.mxu3 %v1499_v52  ;;  %2096 = vtanh.f32 %v584_v29 }
 0x25a   :  { %v2087_v53 = vpop.eup %2086  ;;  %v1424_v25 = vadd.f32 %v3167_v3, %v1423_v54  ;;  %2098 = vtanh.f32 %v582_v59 }
 0x25b   :  { %v3183_v50 = vpop.eup %2088  ;;  %v1436_v60 = vmul.f32 %v2087_v53, %v879_v20  ;;  %vm1441_vm5 = vweird.f32 %v2087_v53  ;;  %v579_v20 = vadd.f32 %v3155_v33, %v2484_v24 }
 0x25c   :  { %v3185_v5 = vpop.eup %2090  ;;  %v1406_v26 = vmul.f32 %v3183_v50, %v3160_v9  ;;  %vm3208_vm7 = vmor %vm1440_vm0, %vm1441_vm5  ;;  %v1428_v45 = vsel %vm3219_vm9, %v3167_v3, %v1424_v25  ;;  %vm1411_vm15 = vweird.f32 %v3183_v50  ;;  %v1371_v25 = vand.u32 2147483648, %v3181_v39 }
 0x25d   :  { %v1437_v32 = vsub.f32 1.0, %v1436_v60  ;;  %v1391_v52 = vmul.f32 %v3185_v5, %v3165_v1  ;;  %v3198_v0 = vpop.eup %2092  ;;  %v1433_v10 = vsel %vm1430_vm14, %v1432_v4, %v1428_v45  ;;  %vm1396_vm13 = vweird.f32 %v3185_v5  ;;  %vm3243_vm11 = vmor %vm1410_vm1, %vm1411_vm15  ;;  %v3417_v45 = vld [vmem:[#allocation17_spill] sm:$0xff] }
 0x25e   :  { %v1407_v7 = vsub.f32 1.0, %v1406_v26  ;;  %v3201_v8 = vpop.eup %2094  ;;  %v1376_v30 = vmul.f32 %v3198_v0, %v3171_v62  ;;  %2100 = vtanh.f32 %v579_v20  ;;  %vm3254_vm12 = vmor %vm1395_vm2, %vm1396_vm13  ;;  %vm1381_vm5 = vweird.f32 %v3198_v0 }
 0x25f   :  { %v1438_v21 = vmul.f32 %v2087_v53, %v1437_v32  ;;  %v1392_v18 = vsub.f32 1.0, %v1391_v52  ;;  %v1361_v46 = vmul.f32 %v3201_v8, %v3181_v39  ;;  %v2097_v3 = vpop.eup %2096  ;;  %v1399_v32 = vand.u32 2147483647, %v3165_v1 }
 0x260   :  { %v1408_v38 = vmul.f32 %v3183_v50, %v1407_v7  ;;  %v1377_v47 = vsub.f32 1.0, %v1376_v30  ;;  %v2099_v61 = vpop.eup %2098  ;;  %2102 = vtanh.f32 %v577_v63  ;;  %v1417_v52 = vor.u32 1.1754944e-38, %v1416_v13 }
 0x261   :  { %1532 = vmatpush.bf16.xpose.msrb.mxu3 %v1498_v23  ;;  %v1439_v31 = vadd.f32 %v2087_v53, %v1438_v21  ;;  %v1393_v56 = vmul.f32 %v3185_v5, %v1392_v18  ;;  %v1362_v6 = vsub.f32 1.0, %v1361_v46  ;;  %v1486_v48 = vmul.f32 %v2099_v61, %v1433_v10 }
 0x262   :  { %v1409_v57 = vadd.f32 %v3183_v50, %v1408_v38  ;;  %v1378_v22 = vmul.f32 %v3198_v0, %v1377_v47  ;;  %vm1400_vm3 = vcmp.eq.f32.partialorder %v1399_v32, 8.507059e+37  ;;  %vm1366_vm0 = vweird.f32 %v3201_v8 }
 0x263   :  { %v1443_v14 = vsel %vm3208_vm7, %v2087_v53, %v1439_v31  ;;  %v1394_v53 = vadd.f32 %v3185_v5, %v1393_v56  ;;  %vm1382_vm7 = vmor %vm1380_vm6, %vm1381_vm5  ;;  %v1372_v23 = vor.u32 1.1754944e-38, %v1371_v25  ;;  %v3418_v56 = vld [vmem:[#allocation16_spill] sm:$0xff]  ;;  %vm1563_vm15 = vcmask 1043458  }
 0x264   :  { %v1448_v41 = vsel %vm1445_vm10, %v1447_v36, %v1443_v14  ;;  %v1413_v26 = vsel %vm3243_vm11, %v3183_v50, %v1409_v57  ;;  %v574_v50 = vadd.f32 %v3102_v40, %v2484_v24  ;;  %v1379_v31 = vadd.f32 %v3198_v0, %v1378_v22  ;;  %v2101_v18 = vpop.eup %2100  ;;  %vm1367_vm9 = vmor %vm1365_vm8, %vm1366_vm0  ;;  %v3416_v36 = vld [vmem:[#allocation8_spill] sm:$0xff] }
 0x265   :  { %v1487_v33 = vmul.f32 %v2097_v3, %v1448_v41  ;;  %v1398_v54 = vsel %vm3254_vm12, %v3185_v5, %v1394_v53  ;;  %v1418_v7 = vsel %vm1415_vm4, %v1417_v52, %v1413_v26  ;;  %v572_v5 = vadd.f32 %v3068_v58, %v2484_v24 }
 0x266   :  { %v1386_v40 = vand.u32 2147483648, %v3171_v62  ;;  %v1485_v12 = vmul.f32 %v2101_v18, %v1418_v7  ;;  %2104 = vtanh.f32 %v574_v50  ;;  %v1369_v24 = vand.u32 2147483647, %v3181_v39 }
 0x267   :  { %v1506_v21 = vpack.c.bf16 %v1487_v33, %v1486_v48  ;;  %v1383_v58 = vsel %vm1382_vm7, %v3198_v0, %v1379_v31  ;;  %2106 = vtanh.f32 %v572_v5  ;;  %vm1385_vm10 = vcmp.eq.f32.partialorder %v1384_v44, 8.507059e+37 }
 0x268   :  { %v1387_v30 = vor.u32 1.1754944e-38, %v1386_v40  ;;  %vm1370_vm14 = vcmp.eq.f32.partialorder %v1369_v24, 8.507059e+37  ;;  %vm1558_vm13 = vcmask 1041408   ;;  %vm1571_vm1 = vcmask 353280  }
 0x269   :  { %1533 = vmatpush.bf16.xpose.msrb.mxu3 %v1497_v34  ;;  %v1401_v34 = vand.u32 2147483648, %v3165_v1  ;;  %v1363_v1 = vmul.f32 %v3201_v8, %v1362_v6  ;;  %vm1564_vm2 = vmor %vm1563_vm15, %vm1558_vm13  ;;  %vm1565_vm11 = vcmask 357380   ;;  %vm1560_vm12 = vcmask 1043456  }
 0x26a   :  { %v1388_v42 = vsel %vm1385_vm10, %v1387_v30, %v1383_v58  ;;  %vm1566_vm4 = vmor %vm1565_vm11, %vm1564_vm2  ;;  %v2169_v26 = vmov -1e+30   ;;  %v2170_v22 = vmov 0.0   ;;  %vm61_vm5 = vcmask 517120  }
 0x26b   :  { %v1402_v29 = vor.u32 1.1754944e-38, %v1401_v34  ;;  %v1364_v17 = vadd.f32 %v3201_v8, %v1363_v1  ;;  %62 = vst.msk [vmem:[#allocation2] sm:$0x3] %vm61_vm5, %v2170_v22  ;;  %vm1621_vm0 = vcmask 1045504   ;;  %vm1617_vm6 = vcmask 359424  }
 0x26c   :  { %v1622_v24 = vsel %vm1621_vm0, %v2850_v49, 0 }
 0x26d   :  { %v1403_v59 = vsel %vm1400_vm3, %v1402_v29, %v1398_v54  ;;  %v1368_v15 = vsel %vm1367_vm9, %v3201_v8, %v1364_v17  ;;  %v3415_v8 = vld [vmem:[#allocation9_spill] sm:$0xff]  ;;  %vm58_vm3 = vcmask 1024  }
 0x26e   :  { %v1373_v38 = vsel %vm1370_vm14, %v1372_v23, %v1368_v15  ;;  %59 = vst.msk [vmem:[%s3348_s6] sm:$0x3] %vm58_vm3, %v2169_v26  ;;  %v3425_v15 = vld [vmem:[#allocation19_spill] sm:$0xff]  ;;  %v3426_v23 = vld [vmem:[#allocation18_spill] sm:$0xff] }
 0x26f   :  { %60 = vst.msk [vmem:[%s3349_s7] sm:$0x3] %vm58_vm3, %v2170_v22 }
 0x271   :  { %1534 = vmatpush.bf16.xpose.msrb.mxu3 %v1496_v16  ;;  %v2103_v16 = vpop.eup %2102 }
 0x272   :  { %v1484_v28 = vmul.f32 %v2103_v16, %v1403_v59  ;;  %v2105_v14 = vpop.eup %2104 }
 0x273   :  { %v1483_v39 = vmul.f32 %v2105_v14, %v1388_v42  ;;  %v2107_v46 = vpop.eup %2106 }
 0x274   :  { %v1505_v62 = vpack.c.bf16 %v1485_v12, %v1484_v28  ;;  %v1482_v0 = vmul.f32 %v2107_v46, %v1373_v38 }
 0x275   :  { %v1568_v9 = vld [vmem:[%s3348_s6] sm:$0x3] }
 0x276   :  { %v1504_v2 = vpack.c.bf16 %v1483_v39, %v1482_v0  ;;  %v1595_v49 = vld [vmem:[%s3349_s7] sm:$0x3] }
 0x278   :  { %1535 = vmatmul.bf16.vlgmr.msrb.gmra.mxu3 %v3142_v55 }
 0x279   :  { %1545 = vmatpush.bf16.xpose.msra.mxu3 %v1506_v21 }
 0x27b   :  { %v1512_v41 = vpop.permute.xlu0 %1511 }
 0x281   :  { %1546 = vmatpush.bf16.xpose.msra.mxu3 %v1505_v62 }
 0x289   :  { %1547 = vmatpush.bf16.xpose.msra.mxu3 %v1504_v2 }
 0x290   :  { %1548 = vmatmul.bf16.vlgmr.msra.gmra.mxu3 %v3142_v55  ;;  %v3421_v55 = vld [vmem:[#allocation13_spill] sm:$0xff] }
 0x291   :  { %1624 = vmatpush.bf16.msrb.mxu3 %v2437_v51  ;;  %v3419_v51 = vld [vmem:[#allocation15_spill] sm:$0xff] }
 0x295   :  { %1625 = vmatpush.bf16.msrb.mxu3 %v2424_v43  ;;  %v3420_v43 = vld [vmem:[#allocation14_spill] sm:$0xff] }
 0x299   :  { %1626 = vmatpush.bf16.msrb.mxu3 %v2411_v35  ;;  %v3422_v35 = vld [vmem:[#allocation12_spill] sm:$0xff] }
 0x29d   :  { %1627 = vmatpush.bf16.msrb.mxu3 %v2398_v27  ;;  %v3423_v27 = vld [vmem:[#allocation11_spill] sm:$0xff] }
 0x2a1   :  { %1628 = vmatpush.bf16.msrb.mxu3 %v2385_v19  ;;  %v3424_v19 = vld [vmem:[#allocation10_spill] sm:$0xff] }
 0x2a5   :  { %1629 = vmatpush.bf16.msrb.mxu3 %v2372_v11 }
 0x2a9   :  { %1630 = vmatpush.bf16.msrb.mxu3 %v3415_v8 }
 0x2ad   :  { %1631 = vmatpush.bf16.msrb.mxu3 %v3416_v36 }
 0x2b1   :  { %1637 = vmatpush.bf16.msra.mxu3 %v3417_v45  ;;  %v1607_v45 = vld [vmem:[#allocation2] sm:$0x3] }
 0x2b5   :  { %1638 = vmatpush.bf16.msra.mxu3 %v3418_v56 }
 0x2b6   :  { %v1523_v11 = vpop.f32.mrf.mxu3 }
 0x2b7   :  { %v1524_v57 = vadd.f32 %v1523_v11, %v1512_v41 }
 0x2b9   :  { %1639 = vmatpush.bf16.msra.mxu3 %v3419_v51  ;;  %v1569_v33 = vsel %vm1558_vm13, %v1524_v57, -inf }
 0x2bd   :  { %1640 = vmatpush.bf16.msra.mxu3 %v3420_v43 }
 0x2be   :  { %v1525_v63 = vpop.f32.mrf.mxu3 }
 0x2c1   :  { %1641 = vmatpush.bf16.msra.mxu3 %v3421_v55 }
 0x2c5   :  { %1642 = vmatpush.bf16.msra.mxu3 %v3422_v35 }
 0x2c9   :  { %1643 = vmatpush.bf16.msra.mxu3 %v3423_v27 }
 0x2cd   :  { %1644 = vmatpush.bf16.msra.mxu3 %v3424_v19 }
 0x2fb   :  { %v1536_v20 = vpop.f32.mrf.mxu3 }
 0x2fc   :  { %v1537_v47 = vadd.f32 %v1536_v20, %v1512_v41 }
 0x2fe   :  { %v1570_v3 = vsel %vm1558_vm13, %v1537_v47, -inf  ;;  %v1556_v6 = vrot.slane %v1537_v47, 6 }
 0x2ff   :  { %v1573_v53 = vmax.f32 %v1569_v33, %v1570_v3 }
 0x300   :  { %v1559_v60 = vsel %vm1558_vm13, %v1524_v57, %v1556_v6 }
 0x303   :  { %v1538_v4 = vpop.f32.mrf.mxu3 }
 0x313   :  { %v1549_v10 = vpop.f32.mrf.mxu3 }
 0x314   :  { %v1550_v13 = vadd.f32 %v1549_v10, %v1512_v41 }
 0x316   :  { %v1557_v37 = vrot.slane %v1550_v13, 4  ;;  %v1572_v61 = vsel %vm1571_vm1, %v1550_v13, -inf }
 0x317   :  { %v1574_v34 = vmax.f32 %v1573_v53, %v1572_v61 }
 0x318   :  { %v1561_v48 = vsel %vm1560_vm12, %v1559_v60, %v1557_v37 }
 0x319   :  { %1575 = vmax.xlane.f32.xlu0 %v1574_v34  ;;  %1567 = vst.msk [vmem:[#allocation4] sm:$0x3f] %vm1566_vm4, %v1561_v48 }
 0x31b   :  { %v1551_v32 = vpop.f32.mrf.mxu3 }
 0x38c   :  { %v1576_v52 = vpop.xlane.xlu0 %1575 }
 0x38d   :  { %v1577_v21 = vmax.f32 %v1568_v9, %v1576_v52 }
 0x38f   :  { %v1578_v54 = vsub.f32 %v1568_v9, %v1577_v21  ;;  %1666 = vst.msk [vmem:[%s3348_s6] sm:$0x3] %vm58_vm3, %v1577_v21  ;;  %1583 = vperm.xlu1 %1879, %v1577_v21   ;;  %s2171_s6 = smov [#allocation4]  }
 0x390   :  { %s1691_s22 = sshll.u32 %s2171_s6, 4  ;;  %s1692_s22 = int_to_ptr.vmem [resolvable:$true] %s1691_s22 }
 0x391   :  { %v1579_v1 = vmul.f32 1.442695, %v1578_v54  ;;  %1696 = dma.vmem_to_hbm [thread:$0]  %s1692_s22, 96, %s1694_s1, [#allocation5]  }
 0x393   :  { %2108 = vpow2.f32 %v1579_v1 }
 0x399   :  { %v2109_v50 = vpop.eup %2108 }
 0x39a   :  { %1610 = vperm.xlu1 %1879, %v2109_v50   ;;  %v1596_v38 = vmul.f32 %v2109_v50, %v1595_v49 }
 0x401   :  { %v1584_v29 = vpop.permute.xlu1 %1583 }
 0x402   :  { %v1586_v7 = vsub.f32 %v1524_v57, %v1584_v29  ;;  %v1587_v31 = vsub.f32 %v1537_v47, %v1584_v29  ;;  %v1588_v18 = vsub.f32 %v1550_v13, %v1584_v29 }
 0x404   :  { %v1589_v5 = vmul.f32 1.442695, %v1586_v7  ;;  %v1591_v59 = vmul.f32 1.442695, %v1587_v31  ;;  %v1593_v40 = vmul.f32 1.442695, %v1588_v18 }
 0x406   :  { %2110 = vpow2.f32 %v1589_v5 }
 0x407   :  { %2112 = vpow2.f32 %v1591_v59 }
 0x408   :  { %2114 = vpow2.f32 %v1593_v40 }
 0x40c   :  { %v2111_v12 = vpop.eup %2110  ;;  %v1611_v56 = vpop.permute.xlu1 %1610 }
 0x40d   :  { %v2113_v17 = vpop.eup %2112  ;;  %v1614_v44 = vpack.c.bf16 %v2111_v12, %v2111_v12  ;;  %v1597_v16 = vsel %vm1558_vm13, %v2111_v12, 0.0  ;;  %v1613_v55 = vmul.f32 %v1611_v56, %v1607_v45 }
 0x40e   :  { %v2115_v25 = vpop.eup %2114  ;;  %v1598_v28 = vsel %vm1558_vm13, %v2113_v17, 0.0  ;;  %v1615_v42 = vpack.c.bf16 %v2113_v17, %v2113_v17 }
 0x40f   :  { %1632 = vmatmul.bf16.vlgmr.msrb.gmra.mxu3 %v1614_v44  ;;  %v1599_v58 = vadd.f32 %v1598_v28, %v1597_v16  ;;  %v1600_v30 = vsel %vm1571_vm1, %v2115_v25, 0.0  ;;  %v1616_v14 = vpack.c.bf16 %v2115_v25, %v2115_v25 }
 0x410   :  { %1655 = vmatpush.bf16.msrb.mxu3 %v1622_v24 }
 0x411   :  { %v1601_v62 = vadd.f32 %v1600_v30, %v1599_v58 }
 0x413   :  { %1602 = vadd.xlane.f32.xlu2 %v1601_v62 }
 0x414   :  { %1656 = vmatpush.bf16.msrb.mxu3 %v3425_v15 }
 0x418   :  { %1657 = vmatpush.bf16.msrb.mxu3 %v3426_v23 }
 0x41f   :  { %1645 = vmatmul.bf16.vlgmr.msra.gmra.mxu3 %v1615_v42 }
 0x42f   :  { %1860 = vmatmul.msk.bf16.vlgmr.msrb.gmra.mxu3 %vm1617_vm6, %v1616_v14 }
 0x486   :  { %v1603_v39 = vpop.xlane.xlu2 %1602 }
 0x487   :  { %v1604_v46 = vadd.f32 %v1603_v39, %v1596_v38 }
 0x489   :  { %1606 = vst.msk [vmem:[%s3349_s7] sm:$0x3] %vm58_vm3, %v1604_v46 }
 0x492   :  { %v1633_v0 = vpop.f32.mrf.mxu3 }
 0x49a   :  { %v1635_v2 = vpop.f32.mrf.mxu3 }
 0x4a2   :  { %v1646_v8 = vpop.f32.mrf.mxu3 }
 0x4a3   :  { %v1647_v51 = vadd.f32 %v1646_v8, %v1633_v0 }
 0x4aa   :  { %v1648_v36 = vpop.f32.mrf.mxu3 }
 0x4b2   :  { %v1659_v43 = vpop.f32.mrf.mxu3 }
 0x4b3   :  { %v1660_v35 = vadd.f32 %v1659_v43, %v1647_v51 }
 0x4b5   :  { %v1663_v27 = vadd.f32 %v1660_v35, %v1613_v55 }
 0x4b7   :  { %1665 = vst.msk [vmem:[#allocation2] sm:$0x3] %vm61_vm5, %v1663_v27 }
 0x4b8   :  { %1681 = dma.vmem_to_hbm [thread:$0]  %s1677_s29, 32, %s1679_s3, [#allocation3]  }
 0x4ba   :  { %v1661_v19 = vpop.f32.mrf.mxu3 }
 0x4bb   :  { %2164 = dma.done.wait [#allocation3], 32  }
 0x4bc   :  { %2165 = vsyncadd [#allocation3], 4294967264 }
 0x4bd   :  { %2166 = dma.done.wait [#allocation5], 96  }
 0x4be   :  { %2167 = vsyncadd [#allocation5], 4294967200 }
 0x4bf   :  { %1709 = vsyncpa [#allocation3], 1 }
 0x4c0   :  { %1710 = vsyncpa [#allocation5], 1 }

</bundles_post_ra>
